<compile_context>
chip_gen: v5e
topology: v5e:2x2
jax: 0.10.0
libtpu: 0.0.40
codegen_flags: <defaults>
</compile_context>

<pallas_src>
import functools

import jax
import jax.numpy as jnp
from jax.experimental import pallas as pl
from jax.experimental.pallas import tpu as pltpu


# ----------------------------------------------------------------------------- tiling

def _pick_tile(dim, target, align):
    """Largest tile <= target that divides `dim` and is a multiple of `align`.
    If dim <= target, the whole dim is used (block == full extent is always legal)."""
    if dim <= target:
        return dim
    t = (target // align) * align
    while t >= align:
        if dim % t == 0:
            return t
        t -= align
    # TODO(synk): pad+mask path for large dims with no aligned divisor <= target.
    return dim


# ----------------------------------------------------------------------------- matmul

def _matmul_bias_kernel(x_ref, w_ref, b_ref, o_ref, acc_ref):
    # grid = (M/tm, N/tn, K/tk); K is the reduction axis (last, "arbitrary").
    @pl.when(pl.program_id(2) == 0)
    def _():
        acc_ref[...] = jnp.zeros_like(acc_ref)

    acc_ref[...] += jnp.dot(x_ref[...], w_ref[...],
                            preferred_element_type=jnp.float32)

    @pl.when(pl.program_id(2) == pl.num_programs(2) - 1)
    def _():
        o_ref[...] = (acc_ref[...] + b_ref[...]).astype(o_ref.dtype)


def matmul_bias(x, w, b, *, tm=256, tn=512, tk=1024):
    """Y = X @ W + b with bf16 MXU inputs and f32 accumulation."""
    m, k = x.shape
    k2, n = w.shape
    assert k == k2
    tm = _pick_tile(m, tm, 8)
    tn = _pick_tile(n, tn, 128)
    tk = _pick_tile(k, tk, 128)
    grid = (m // tm, n // tn, k // tk)
    return pl.pallas_call(
        _matmul_bias_kernel,
        out_shape=jax.ShapeDtypeStruct((m, n), jnp.float32),
        grid_spec=pltpu.PrefetchScalarGridSpec(
            num_scalar_prefetch=0,
            grid=grid,
            in_specs=[
                pl.BlockSpec((tm, tk), lambda i, j, kk: (i, kk)),
                pl.BlockSpec((tk, tn), lambda i, j, kk: (kk, j)),
                pl.BlockSpec((1, tn), lambda i, j, kk: (0, j)),
            ],
            out_specs=pl.BlockSpec((tm, tn), lambda i, j, kk: (i, j)),
            scratch_shapes=[pltpu.VMEM((tm, tn), jnp.float32)],
        ),
        compiler_params=pltpu.CompilerParams(
            dimension_semantics=("parallel", "parallel", "arbitrary"),
            vmem_limit_bytes=48 * 1024 * 1024,
        ),
    )(x.astype(jnp.bfloat16), w.astype(jnp.bfloat16),
      b.reshape(1, n).astype(jnp.float32))


# ----------------------------------------------------------------------------- VQ loss

def _vq_kernel(z_ref, cbt_ref, e2_ref, loss_ref, *, inv_size):
    # Quantization error to the nearest code is exactly min_k ||z - e_k||^2, so no
    # onehot / quantized-vector materialization. Codebook arrives pre-transposed [D,K]
    # with its squared norms e2 [1,K] precomputed in the wrapper (no in-kernel XLU transpose).
    i = pl.program_id(0)

    @pl.when(i == 0)
    def _():
        loss_ref[...] = jnp.zeros_like(loss_ref)

    z = z_ref[...]
    z2 = jnp.sum(z * z, axis=-1, keepdims=True)                              # [tn, 1]
    dist = z2 - 2.0 * jnp.dot(z, cbt_ref[...],
                              preferred_element_type=jnp.float32) + e2_ref[...]
    min_d = jnp.maximum(jnp.min(dist, axis=-1, keepdims=True), 0.0)          # [tn, 1]
    loss_ref[...] += jnp.sum(min_d)

    @pl.when(i == pl.num_programs(0) - 1)
    def _():
        loss_ref[...] *= inv_size


def vq_loss_fn(z, codebook, *, tn=512):
    n, d = z.shape
    k = codebook.shape[0]
    tn = _pick_tile(n, tn, 8)
    cb = codebook.astype(jnp.float32)
    cbt = cb.T                                       # [D, K]
    e2 = jnp.sum(cb * cb, axis=-1).reshape(1, k)     # [1, K]
    kernel = functools.partial(_vq_kernel, inv_size=1.0 / float(n * d))
    out = pl.pallas_call(
        kernel,
        out_shape=jax.ShapeDtypeStruct((1, 1), jnp.float32),
        grid=(n // tn,),
        in_specs=[
            pl.BlockSpec((tn, d), lambda i: (i, 0)),
            pl.BlockSpec((d, k), lambda i: (0, 0)),
            pl.BlockSpec((1, k), lambda i: (0, 0)),
        ],
        out_specs=pl.BlockSpec((1, 1), lambda i: (0, 0)),
        compiler_params=pltpu.CompilerParams(
            dimension_semantics=("arbitrary",),
            vmem_limit_bytes=48 * 1024 * 1024,
        ),
    )(z.astype(jnp.float32), cbt, e2)
    return out[0, 0]


# ----------------------------------------------------------------------------- diffusion

def _diffusion_loss_kernel(coef_ref, x0_ref, noise_ref, part_ref):
    # Rows are (batch, channel) pairs; columns are flattened H*W (lane dim), tiled.
    # Per-bc-block partial sums are accumulated in the grid-resident (1,1,1) output
    # block across the hw ("arbitrary") axis; the bc axis is "parallel" (megacore).
    j = pl.program_id(1)

    @pl.when(j == 0)
    def _():
        part_ref[...] = jnp.zeros_like(part_ref)

    coef = coef_ref[...]                       # (tbc, 3) = [a | b | c] packed
    a = coef[:, 0:1]
    b = coef[:, 1:2]
    c = coef[:, 2:3]
    x0 = x0_ref[...].astype(jnp.float32)
    noise = noise_ref[...].astype(jnp.float32)
    #   pred_noise - noise = (sab*scale)*x0 + (s1m*scale - 1)*noise + cond_bias
    diff = a * x0 + b * noise + c
    part_ref[...] += jnp.sum(diff * diff)


def diffusion_denoise_loss(x0_flat, noise_flat, coef, *, tbc=128, thw=8192):
    bc, hw = x0_flat.shape
    tbc = _pick_tile(bc, tbc, 8)
    thw = _pick_tile(hw, thw, 128)
    nbc, nhw = bc // tbc, hw // thw
    partials = pl.pallas_call(
        _diffusion_loss_kernel,
        out_shape=jax.ShapeDtypeStruct((nbc, 1, 1), jnp.float32),
        grid=(nbc, nhw),
        in_specs=[
            pl.BlockSpec((tbc, 3), lambda i, j: (i, 0)),    # packed [a|b|c]
            pl.BlockSpec((tbc, thw), lambda i, j: (i, j)),  # x0 (bf16 stream)
            pl.BlockSpec((tbc, thw), lambda i, j: (i, j)),  # noise (bf16 stream)
        ],
        out_specs=pl.BlockSpec((1, 1, 1), lambda i, j: (i, 0, 0)),
        compiler_params=pltpu.CompilerParams(
            dimension_semantics=("parallel", "arbitrary"),
            vmem_limit_bytes=48 * 1024 * 1024,
        ),
    )(coef.astype(jnp.float32), x0_flat, noise_flat)
    return jnp.sum(partials) / float(bc * hw)


# ----------------------------------------------------------------------------- pipeline

def init_params(key, *, C, H, W, D_text, D_model, S, K_codes):
    ks = jax.random.split(key, 6)
    p = {}
    p["w_text"] = jax.random.normal(ks[0], (D_text, D_model), jnp.float32) * 0.05
    p["b_text"] = jnp.zeros((D_model,), jnp.float32)
    flat = C * H * W
    # Only the style_seqs projection is kept in the loss path (style_features head is
    # consumed solely by the optional contrastive branch, absent here).
    p["w_seq"] = jax.random.normal(ks[1], (flat, S * D_model), jnp.float32) * 0.02
    p["b_seq"] = jnp.zeros((S * D_model,), jnp.float32)
    p["codebook"] = jax.random.normal(ks[2], (K_codes, D_model), jnp.float32)
    p["w_cond"] = jax.random.normal(ks[3], (2 * D_model, C), jnp.float32) * 0.05
    p["b_cond"] = jnp.zeros((C,), jnp.float32)
    p["w_scale"] = 1.0 + 0.1 * jax.random.normal(ks[4], (C,), jnp.float32)
    return p


@functools.partial(jax.jit, static_argnames=("S", "D_model", "num_timesteps"))
def pipeline_forward(images, anchor_images, style_images, text_embeddings, wids,
                     params, key, *, S, D_model, num_timesteps=10):
    """Mirrors HandwritingGenerationPipeline.forward (no contrastive heads,
    loss_balancing=False). Returns {'vq_loss': scalar, 'denoise_loss': scalar}."""
    B, C, H, W = images.shape

    # Computed in the PyTorch forward; only contrastive branches consume them (absent).
    target_images = (images + 1.0) * 0.5          # noqa: F841
    anchor_images = (anchor_images + 1.0) * 0.5   # noqa: F841

    # ---- text encoder ----
    # text_features is only consumed through its sequence mean and the projection is
    # linear, so project the mean: tiny [B, D_text] @ [D_text, D_model] in plain XLA.
    text_cond = text_embeddings.mean(axis=1) @ params["w_text"] + params["b_text"]

    # ---- style extractor (single weight-streaming matmul; style_features head dropped) ----
    # TODO(synk): style_features projection omitted — only the absent contrastive head uses it.
    s_flat = style_images.reshape(B, -1)
    style_seqs = matmul_bias(s_flat, params["w_seq"], params["b_seq"]).reshape(B, S, D_model)
    vq_loss = vq_loss_fn(style_seqs.reshape(B * S, D_model), params["codebook"])

    # ---- diffusion (vae = Identity since latent=False) ----
    k_t, k_n = jax.random.split(key)
    betas = jnp.linspace(1e-4, 0.02, num_timesteps, dtype=jnp.float32)
    alphas_bar = jnp.cumprod(1.0 - betas)
    t = jax.random.randint(k_t, (B,), 0, num_timesteps)
    sab = jnp.sqrt(alphas_bar[t])                 # [B]
    s1m = jnp.sqrt(1.0 - alphas_bar[t])           # [B]

    # Conditioning bias per (batch, channel): tiny [B, 2D] @ [2D, C] — plain XLA.
    cond = jnp.concatenate([text_cond, style_seqs.mean(axis=1)], axis=-1)
    cond_bias = cond @ params["w_cond"] + params["b_cond"]                  # [B, C]

    BC, HW = B * C, H * W
    # Fold q_sample + per-channel predictor scale into per-row affine coefficients,
    # packed into one (BC, 3) operand:  pred_noise - noise = a*x0 + b*noise + c.
    a_rows = (sab[:, None] * params["w_scale"][None, :]).reshape(BC)
    b_rows = (s1m[:, None] * params["w_scale"][None, :] - 1.0).reshape(BC)
    c_rows = cond_bias.reshape(BC)
    coef = jnp.stack([a_rows, b_rows, c_rows], axis=1)                      # [BC, 3]

    x0_flat = images.reshape(BC, HW).astype(jnp.bfloat16)
    # Gaussian noise generated in XLA (in-kernel pltpu PRNG has no interpret lowering)
    # and streamed as bf16 to keep the diffusion kernel's HBM traffic at 4 B/elem.
    noise_flat = jax.random.normal(k_n, (BC, HW), jnp.float32).astype(jnp.bfloat16)

    denoise_loss = diffusion_denoise_loss(x0_flat, noise_flat, coef)

    # TODO(synk): optional style/patch contrastive heads and loss_balancing
    # autograd weighting are training-only and not reproduced here.
    return {"vq_loss": vq_loss, "denoise_loss": denoise_loss}


# ----------------------------------------------------------------------------- main

if __name__ == "__main__":
    B, C, H, W = 2, 4, 16, 16
    T, D_text, D_model, S, K_codes = 8, 32, 32, 8, 8

    root = jax.random.PRNGKey(0)
    k_img, k_anchor, k_style, k_text, k_params, k_fwd = jax.random.split(root, 6)

    images = jax.random.uniform(k_img, (B, C, H, W), jnp.float32, -1.0, 1.0)
    anchor_images = jax.random.uniform(k_anchor, (B, C, H, W), jnp.float32, -1.0, 1.0)
    style_images = jax.random.uniform(k_style, (B, C, H, W), jnp.float32, -1.0, 1.0)
    text_embeddings = jax.random.normal(k_text, (B, T, D_text), jnp.float32)
    wids = jnp.arange(B, dtype=jnp.int32)

    params = init_params(k_params, C=C, H=H, W=W, D_text=D_text,
                         D_model=D_model, S=S, K_codes=K_codes)

    losses = pipeline_forward(images, anchor_images, style_images, text_embeddings,
                              wids, params, k_fwd, S=S, D_model=D_model)
    losses = jax.block_until_ready(losses)

    assert bool(jnp.isfinite(losses["vq_loss"])) and bool(jnp.isfinite(losses["denoise_loss"]))
    print("KERNEL_OK")
</pallas_src>

<mosaic_0001>
module attributes {stable_mosaic.version = 11 : i64} {
  func.func @_matmul_bias_kernel(%arg0: i32, %arg1: i32, %arg2: i32, %arg3: memref<2x1024xbf16, #tpu.memory_space<vmem>>, %arg4: memref<1024x256xbf16, #tpu.memory_space<vmem>>, %arg5: memref<1x256xf32, #tpu.memory_space<vmem>>, %arg6: memref<2x256xf32, #tpu.memory_space<vmem>>, %arg7: memref<2x256xf32, #tpu.memory_space<vmem>>) attributes {dimension_semantics = [#tpu.dimension_semantics<parallel>, #tpu.dimension_semantics<parallel>, #tpu.dimension_semantics<arbitrary>], iteration_bounds = array<i64: 1, 1, 1>, scalar_prefetch = 0 : i64, scratch_operands = 1 : i64, tpu.core_type = #tpu.core_type<tc>, window_params = [{transform_indices = @transform_0, window_bounds = array<i64: 2, 1024>}, {transform_indices = @transform_1, window_bounds = array<i64: 1024, 256>}, {transform_indices = @transform_2, window_bounds = array<i64: 1, 256>}, {transform_indices = @transform_3, window_bounds = array<i64: 2, 256>}]} {
    %c0_i32 = arith.constant 0 : i32
    %0 = arith.cmpi eq, %arg2, %c0_i32 : i32
    %1 = arith.extui %0 : i1 to i32
    %c0_i32_0 = arith.constant 0 : i32
    %2 = arith.cmpi ne, %1, %c0_i32_0 : i32
    scf.if %2 {
      %cst_10 = arith.constant 0.000000e+00 : f32
      %12 = vector.broadcast %cst_10 : f32 to vector<2x256xf32>
      %c0_11 = arith.constant 0 : index
      %c0_12 = arith.constant 0 : index
      %13 = vector.load %arg7[%c0_11, %c0_12] : memref<2x256xf32, #tpu.memory_space<vmem>>, vector<2x256xf32>
      tpu.vector_store %arg7[%c0_11, %c0_12], %12 {strides = array<i32>} : memref<2x256xf32, #tpu.memory_space<vmem>>, vector<2x256xf32>,
    } else {
    }
    %c0 = arith.constant 0 : index
    %c0_1 = arith.constant 0 : index
    %3 = vector.load %arg7[%c0, %c0_1] : memref<2x256xf32, #tpu.memory_space<vmem>>, vector<2x256xf32>
    %c0_2 = arith.constant 0 : index
    %c0_3 = arith.constant 0 : index
    %4 = vector.load %arg3[%c0_2, %c0_3] : memref<2x1024xbf16, #tpu.memory_space<vmem>>, vector<2x1024xbf16>
    %c0_4 = arith.constant 0 : index
    %c0_5 = arith.constant 0 : index
    %5 = vector.load %arg4[%c0_4, %c0_5] : memref<1024x256xbf16, #tpu.memory_space<vmem>>, vector<1024x256xbf16>
    %cst = arith.constant dense<0.000000e+00> : vector<2x256xf32>
    %6 = tpu.matmul %4, %5, %cst {dimension_numbers = #tpu.dot_dimension_numbers<[1], [0], [0], [1], [0, 0, 1, 1], [], []>} : vector<2x1024xbf16>, vector<1024x256xbf16>, vector<2x256xf32> -> vector<2x256xf32>
    %7 = arith.addf %3, %6 : vector<2x256xf32>
    %c0_6 = arith.constant 0 : index
    %c0_7 = arith.constant 0 : index
    %8 = vector.load %arg7[%c0_6, %c0_7] : memref<2x256xf32, #tpu.memory_space<vmem>>, vector<2x256xf32>
    tpu.vector_store %arg7[%c0_6, %c0_7], %7 {strides = array<i32>} : memref<2x256xf32, #tpu.memory_space<vmem>>, vector<2x256xf32>,
    %c0_i32_8 = arith.constant 0 : i32
    %9 = arith.cmpi eq, %arg2, %c0_i32_8 : i32
    %10 = arith.extui %9 : i1 to i32
    %c0_i32_9 = arith.constant 0 : i32
    %11 = arith.cmpi ne, %10, %c0_i32_9 : i32
    scf.if %11 {
      %c0_10 = arith.constant 0 : index
      %c0_11 = arith.constant 0 : index
      %12 = vector.load %arg7[%c0_10, %c0_11] : memref<2x256xf32, #tpu.memory_space<vmem>>, vector<2x256xf32>
      %c0_12 = arith.constant 0 : index
      %c0_13 = arith.constant 0 : index
      %13 = vector.load %arg5[%c0_12, %c0_13] : memref<1x256xf32, #tpu.memory_space<vmem>>, vector<1x256xf32>
      %14 = vector.broadcast %13 : vector<1x256xf32> to vector<2x256xf32>
      %15 = arith.addf %12, %14 : vector<2x256xf32>
      %c0_14 = arith.constant 0 : index
      %c0_15 = arith.constant 0 : index
      %16 = vector.load %arg6[%c0_14, %c0_15] : memref<2x256xf32, #tpu.memory_space<vmem>>, vector<2x256xf32>
      tpu.vector_store %arg6[%c0_14, %c0_15], %15 {strides = array<i32>} : memref<2x256xf32, #tpu.memory_space<vmem>>, vector<2x256xf32>,
    } else {
    }
    return
  }
  func.func @transform_0(%arg0: i32, %arg1: i32, %arg2: i32) -> (i32, i32) {
    %c0_i32 = arith.constant 0 : i32
    return %arg0, %arg2 : i32, i32
  }
  func.func @transform_1(%arg0: i32, %arg1: i32, %arg2: i32) -> (i32, i32) {
    %c0_i32 = arith.constant 0 : i32
    return %arg2, %arg1 : i32, i32
  }
  func.func @transform_2(%arg0: i32, %arg1: i32, %arg2: i32) -> (i32, i32) {
    %c0_i32 = arith.constant 0 : i32
    %c0_i32_0 = arith.constant 0 : i32
    return %c0_i32, %arg1 : i32, i32
  }
  func.func @transform_3(%arg0: i32, %arg1: i32, %arg2: i32) -> (i32, i32) {
    %c0_i32 = arith.constant 0 : i32
    return %arg0, %arg1 : i32, i32
  }
}

module attributes {stable_mosaic.version = 11 : i64} {
  func.func @_diffusion_loss_kernel(%arg0: i32, %arg1: i32, %arg2: memref<8x3xf32, #tpu.memory_space<vmem>>, %arg3: memref<8x256xbf16, #tpu.memory_space<vmem>>, %arg4: memref<8x256xbf16, #tpu.memory_space<vmem>>, %arg5: memref<1x1x1xf32, #tpu.memory_space<vmem>>) attributes {dimension_semantics = [#tpu.dimension_semantics<parallel>, #tpu.dimension_semantics<arbitrary>], iteration_bounds = array<i64: 1, 1>, scalar_prefetch = 0 : i64, scratch_operands = 0 : i64, tpu.core_type = #tpu.core_type<tc>, window_params = [{transform_indices = @transform_0, window_bounds = array<i64: 8, 3>}, {transform_indices = @transform_1, window_bounds = array<i64: 8, 256>}, {transform_indices = @transform_2, window_bounds = array<i64: 8, 256>}, {transform_indices = @transform_3, window_bounds = array<i64: 1, 1, 1>}]} {
    %c0_i32 = arith.constant 0 : i32
    %0 = arith.cmpi eq, %arg1, %c0_i32 : i32
    %1 = arith.extui %0 : i1 to i32
    %c0_i32_0 = arith.constant 0 : i32
    %2 = arith.cmpi ne, %1, %c0_i32_0 : i32
    scf.if %2 {
      %cst_12 = arith.constant 0.000000e+00 : f32
      %27 = vector.broadcast %cst_12 : f32 to vector<1x1x1xf32>
      %c0_13 = arith.constant 0 : index
      %c0_14 = arith.constant 0 : index
      %c0_15 = arith.constant 0 : index
      %28 = vector.load %arg5[%c0_13, %c0_14, %c0_15] : memref<1x1x1xf32, #tpu.memory_space<vmem>>, vector<1x1x1xf32>
      tpu.vector_store %arg5[%c0_13, %c0_14, %c0_15], %27 {strides = array<i32>} : memref<1x1x1xf32, #tpu.memory_space<vmem>>, vector<1x1x1xf32>,
    } else {
    }
    %c0 = arith.constant 0 : index
    %c0_1 = arith.constant 0 : index
    %3 = vector.load %arg2[%c0, %c0_1] : memref<8x3xf32, #tpu.memory_space<vmem>>, vector<8x3xf32>
    %4 = vector.extract_strided_slice %3 {offsets = [0, 0], sizes = [8, 1], strides = [1, 1]} : vector<8x3xf32> to vector<8x1xf32>
    %5 = vector.extract_strided_slice %3 {offsets = [0, 1], sizes = [8, 1], strides = [1, 1]} : vector<8x3xf32> to vector<8x1xf32>
    %6 = vector.extract_strided_slice %3 {offsets = [0, 2], sizes = [8, 1], strides = [1, 1]} : vector<8x3xf32> to vector<8x1xf32>
    %c0_2 = arith.constant 0 : index
    %c0_3 = arith.constant 0 : index
    %7 = vector.load %arg3[%c0_2, %c0_3] : memref<8x256xbf16, #tpu.memory_space<vmem>>, vector<8x256xbf16>
    %8 = arith.extf %7 : vector<8x256xbf16> to vector<8x256xf32>
    %c0_4 = arith.constant 0 : index
    %c0_5 = arith.constant 0 : index
    %9 = vector.load %arg4[%c0_4, %c0_5] : memref<8x256xbf16, #tpu.memory_space<vmem>>, vector<8x256xbf16>
    %10 = arith.extf %9 : vector<8x256xbf16> to vector<8x256xf32>
    %11 = vector.broadcast %4 : vector<8x1xf32> to vector<8x256xf32>
    %12 = arith.mulf %11, %8 : vector<8x256xf32>
    %13 = vector.broadcast %5 : vector<8x1xf32> to vector<8x256xf32>
    %14 = arith.mulf %13, %10 : vector<8x256xf32>
    %15 = arith.addf %12, %14 : vector<8x256xf32>
    %16 = vector.broadcast %6 : vector<8x1xf32> to vector<8x256xf32>
    %17 = arith.addf %15, %16 : vector<8x256xf32>
    %c0_6 = arith.constant 0 : index
    %c0_7 = arith.constant 0 : index
    %c0_8 = arith.constant 0 : index
    %18 = vector.load %arg5[%c0_6, %c0_7, %c0_8] : memref<1x1x1xf32, #tpu.memory_space<vmem>>, vector<1x1x1xf32>
    %19 = arith.mulf %17, %17 : vector<8x256xf32>
    %20 = vector.shape_cast %19 : vector<8x256xf32> to vector<1x8x256xf32>
    %cst = arith.constant dense<0.000000e+00> : vector<1xf32>
    %21 = vector.multi_reduction <add>, %20, %cst [1, 2] : vector<1x8x256xf32> to vector<1xf32>
    %22 = vector.shape_cast %21 : vector<1xf32> to vector<1x1x1xf32>
    %23 = vector.extract %22[0, 0, 0] : f32 from vector<1x1x1xf32>
    %24 = vector.broadcast %23 : f32 to vector<1x1x1xf32>
    %25 = arith.addf %18, %24 : vector<1x1x1xf32>
    %c0_9 = arith.constant 0 : index
    %c0_10 = arith.constant 0 : index
    %c0_11 = arith.constant 0 : index
    %26 = vector.load %arg5[%c0_9, %c0_10, %c0_11] : memref<1x1x1xf32, #tpu.memory_space<vmem>>, vector<1x1x1xf32>
    tpu.vector_store %arg5[%c0_9, %c0_10, %c0_11], %25 {strides = array<i32>} : memref<1x1x1xf32, #tpu.memory_space<vmem>>, vector<1x1x1xf32>,
    return
  }
  func.func @transform_0(%arg0: i32, %arg1: i32) -> (i32, i32) {
    %c0_i32 = arith.constant 0 : i32
    %c0_i32_0 = arith.constant 0 : i32
    return %arg0, %c0_i32 : i32, i32
  }
  func.func @transform_1(%arg0: i32, %arg1: i32) -> (i32, i32) {
    %c0_i32 = arith.constant 0 : i32
    return %arg0, %arg1 : i32, i32
  }
  func.func @transform_2(%arg0: i32, %arg1: i32) -> (i32, i32) {
    %c0_i32 = arith.constant 0 : i32
    return %arg0, %arg1 : i32, i32
  }
  func.func @transform_3(%arg0: i32, %arg1: i32) -> (i32, i32, i32) {
    %c0_i32 = arith.constant 0 : i32
    %c0_i32_0 = arith.constant 0 : i32
    %c0_i32_1 = arith.constant 0 : i32
    return %arg0, %c0_i32, %c0_i32_0 : i32, i32, i32
  }
}

module attributes {stable_mosaic.version = 11 : i64} {
  func.func @_vq_kernel(%arg0: i32, %arg1: memref<16x32xf32, #tpu.memory_space<vmem>>, %arg2: memref<32x8xf32, #tpu.memory_space<vmem>>, %arg3: memref<1x8xf32, #tpu.memory_space<vmem>>, %arg4: memref<1x1xf32, #tpu.memory_space<vmem>>) attributes {dimension_semantics = [#tpu.dimension_semantics<arbitrary>], iteration_bounds = array<i64: 1>, scalar_prefetch = 0 : i64, scratch_operands = 0 : i64, tpu.core_type = #tpu.core_type<tc>, window_params = [{transform_indices = @transform_0, window_bounds = array<i64: 16, 32>}, {pipeline_mode = #tpu.pipeline_mode<synchronous>, transform_indices = @transform_1, window_bounds = array<i64: 32, 8>}, {pipeline_mode = #tpu.pipeline_mode<synchronous>, transform_indices = @transform_2, window_bounds = array<i64: 1, 8>}, {pipeline_mode = #tpu.pipeline_mode<synchronous>, transform_indices = @transform_3, window_bounds = array<i64: 1, 1>}]} {
    %c0_i32 = arith.constant 0 : i32
    %0 = arith.cmpi eq, %arg0, %c0_i32 : i32
    %1 = arith.extui %0 : i1 to i32
    %c0_i32_0 = arith.constant 0 : i32
    %2 = arith.cmpi ne, %1, %c0_i32_0 : i32
    scf.if %2 {
      %cst_17 = arith.constant 0.000000e+00 : f32
      %31 = vector.broadcast %cst_17 : f32 to vector<1x1xf32>
      %c0_18 = arith.constant 0 : index
      %c0_19 = arith.constant 0 : index
      %32 = vector.load %arg4[%c0_18, %c0_19] : memref<1x1xf32, #tpu.memory_space<vmem>>, vector<1x1xf32>
      tpu.vector_store %arg4[%c0_18, %c0_19], %31 {strides = array<i32>} : memref<1x1xf32, #tpu.memory_space<vmem>>, vector<1x1xf32>,
    } else {
    }
    %c0 = arith.constant 0 : index
    %c0_1 = arith.constant 0 : index
    %3 = vector.load %arg1[%c0, %c0_1] : memref<16x32xf32, #tpu.memory_space<vmem>>, vector<16x32xf32>
    %4 = arith.mulf %3, %3 : vector<16x32xf32>
    %cst = arith.constant dense<0.000000e+00> : vector<16xf32>
    %5 = vector.multi_reduction <add>, %4, %cst [1] : vector<16x32xf32> to vector<16xf32>
    %6 = vector.shape_cast %5 : vector<16xf32> to vector<16x1xf32>
    %c0_2 = arith.constant 0 : index
    %c0_3 = arith.constant 0 : index
    %7 = vector.load %arg2[%c0_2, %c0_3] : memref<32x8xf32, #tpu.memory_space<vmem>>, vector<32x8xf32>
    %cst_4 = arith.constant dense<0.000000e+00> : vector<16x8xf32>
    %8 = tpu.matmul %3, %7, %cst_4 {dimension_numbers = #tpu.dot_dimension_numbers<[1], [0], [0], [1], [0, 0, 1, 1], [], []>} : vector<16x32xf32>, vector<32x8xf32>, vector<16x8xf32> -> vector<16x8xf32>
    %cst_5 = arith.constant 2.000000e+00 : f32
    %9 = vector.broadcast %cst_5 : f32 to vector<16x8xf32>
    %10 = arith.mulf %9, %8 : vector<16x8xf32>
    %11 = vector.broadcast %6 : vector<16x1xf32> to vector<16x8xf32>
    %12 = arith.subf %11, %10 : vector<16x8xf32>
    %c0_6 = arith.constant 0 : index
    %c0_7 = arith.constant 0 : index
    %13 = vector.load %arg3[%c0_6, %c0_7] : memref<1x8xf32, #tpu.memory_space<vmem>>, vector<1x8xf32>
    %14 = vector.broadcast %13 : vector<1x8xf32> to vector<16x8xf32>
    %15 = arith.addf %12, %14 : vector<16x8xf32>
    %cst_8 = arith.constant dense<0x7F800000> : vector<16xf32>
    %16 = vector.multi_reduction <minimumf>, %15, %cst_8 [1] : vector<16x8xf32> to vector<16xf32>
    %17 = vector.shape_cast %16 : vector<16xf32> to vector<16x1xf32>
    %cst_9 = arith.constant 0.000000e+00 : f32
    %18 = vector.broadcast %cst_9 : f32 to vector<16x1xf32>
    %19 = arith.maximumf %17, %18 : vector<16x1xf32>
    %c0_10 = arith.constant 0 : index
    %c0_11 = arith.constant 0 : index
    %20 = vector.load %arg4[%c0_10, %c0_11] : memref<1x1xf32, #tpu.memory_space<vmem>>, vector<1x1xf32>
    %21 = vector.shape_cast %19 : vector<16x1xf32> to vector<1x16x1xf32>
    %cst_12 = arith.constant dense<0.000000e+00> : vector<1xf32>
    %22 = vector.multi_reduction <add>, %21, %cst_12 [1, 2] : vector<1x16x1xf32> to vector<1xf32>
    %23 = vector.shape_cast %22 : vector<1xf32> to vector<1x1x1xf32>
    %24 = vector.extract %23[0, 0, 0] : f32 from vector<1x1x1xf32>
    %25 = vector.broadcast %24 : f32 to vector<1x1xf32>
    %26 = arith.addf %20, %25 : vector<1x1xf32>
    %c0_13 = arith.constant 0 : index
    %c0_14 = arith.constant 0 : index
    %27 = vector.load %arg4[%c0_13, %c0_14] : memref<1x1xf32, #tpu.memory_space<vmem>>, vector<1x1xf32>
    tpu.vector_store %arg4[%c0_13, %c0_14], %26 {strides = array<i32>} : memref<1x1xf32, #tpu.memory_space<vmem>>, vector<1x1xf32>,
    %c0_i32_15 = arith.constant 0 : i32
    %28 = arith.cmpi eq, %arg0, %c0_i32_15 : i32
    %29 = arith.extui %28 : i1 to i32
    %c0_i32_16 = arith.constant 0 : i32
    %30 = arith.cmpi ne, %29, %c0_i32_16 : i32
    scf.if %30 {
      %c0_17 = arith.constant 0 : index
      %c0_18 = arith.constant 0 : index
      %31 = vector.load %arg4[%c0_17, %c0_18] : memref<1x1xf32, #tpu.memory_space<vmem>>, vector<1x1xf32>
      %cst_19 = arith.constant 0.001953125 : f32
      %32 = vector.broadcast %cst_19 : f32 to vector<1x1xf32>
      %33 = arith.mulf %31, %32 : vector<1x1xf32>
      %c0_20 = arith.constant 0 : index
      %c0_21 = arith.constant 0 : index
      %34 = vector.load %arg4[%c0_20, %c0_21] : memref<1x1xf32, #tpu.memory_space<vmem>>, vector<1x1xf32>
      tpu.vector_store %arg4[%c0_20, %c0_21], %33 {strides = array<i32>} : memref<1x1xf32, #tpu.memory_space<vmem>>, vector<1x1xf32>,
    } else {
    }
    return
  }
  func.func @transform_0(%arg0: i32) -> (i32, i32) {
    %c0_i32 = arith.constant 0 : i32
    %c0_i32_0 = arith.constant 0 : i32
    return %arg0, %c0_i32 : i32, i32
  }
  func.func @transform_1(%arg0: i32) -> (i32, i32) {
    %c0_i32 = arith.constant 0 : i32
    %c0_i32_0 = arith.constant 0 : i32
    %c0_i32_1 = arith.constant 0 : i32
    return %c0_i32, %c0_i32_0 : i32, i32
  }
  func.func @transform_2(%arg0: i32) -> (i32, i32) {
    %c0_i32 = arith.constant 0 : i32
    %c0_i32_0 = arith.constant 0 : i32
    %c0_i32_1 = arith.constant 0 : i32
    return %c0_i32, %c0_i32_0 : i32, i32
  }
  func.func @transform_3(%arg0: i32) -> (i32, i32) {
    %c0_i32 = arith.constant 0 : i32
    %c0_i32_0 = arith.constant 0 : i32
    %c0_i32_1 = arith.constant 0 : i32
    return %c0_i32, %c0_i32_0 : i32, i32
  }
}

</mosaic_0001>

<bundles_post_ra>
// kernel: pipeline_forward.23
= control target key start
LH: loop header
LB: loop body
LE: loop exit
PB: predicated region body
PF: predicated region fallthrough
CT: control target
= control target key end

     0   :  { %vm1018_vm0 = vcmask 1041408   ;;  %s2511_s1 = inlined_call_operand.vmem [shape: bf16[1024,256], index: 1, kind: input, shape index: {}]   ;;  %s2512_s0 = inlined_call_operand.vmem [shape: bf16[2,1024], index: 0, kind: input, shape index: {}]   ;;  %s2513_s2 = inlined_call_operand.vmem [shape: f32[1,256], index: 2, kind: input, shape index: {}]   ;;  %s2514_s3 = inlined_call_operand.vmem [shape: f32[2,256], index: 3, kind: output, shape index: {}]  }
   0x1   :  { %v1098_v0 = vld [vmem:[%s2511_s1 + $0x70] sm:$0xf]  ;;  %v1567_v1 = vld [vmem:[%s2511_s1 + $0x74] sm:$0xf0]  ;;  %v1090_v11 = vld [vmem:[%s2511_s1 + $0x60] sm:$0xf] }
   0x2   :  { %v1162_v2 = vld [vmem:[%s2511_s1 + $0xf0] sm:$0xf]  ;;  %v1099_v3 = vor.u32 %v1567_v1, %v1098_v0  ;;  %v1583_v4 = vld [vmem:[%s2511_s1 + $0xf4] sm:$0xf0]  ;;  %v1565_v13 = vld [vmem:[%s2511_s1 + $0x64] sm:$0xf0] }
   0x3   :  { %v1226_v5 = vld [vmem:[%s2511_s1 + $0x170] sm:$0xf]  ;;  %v1599_v6 = vld [vmem:[%s2511_s1 + $0x174] sm:$0xf0]  ;;  %v1163_v7 = vor.u32 %v1583_v4, %v1162_v2  ;;  %v1154_v14 = vld [vmem:[%s2511_s1 + $0xe0] sm:$0xf]  ;;  %v1091_v16 = vor.u32 %v1565_v13, %v1090_v11 }
   0x4   :  { %v1227_v8 = vor.u32 %v1599_v6, %v1226_v5  ;;  %v1290_v9 = vld [vmem:[%s2511_s1 + $0x1f0] sm:$0xf]  ;;  %v1615_v10 = vld [vmem:[%s2511_s1 + $0x1f4] sm:$0xf0]  ;;  %807 = vmatpush.bf16.msra.mxu0 %v1099_v3  ;;  %v1581_v15 = vld [vmem:[%s2511_s1 + $0xe4] sm:$0xf0] }
   0x5   :  { %v1291_v12 = vor.u32 %v1615_v10, %v1290_v9  ;;  %820 = vmatpush.bf16.msra.mxu1 %v1163_v7  ;;  %v1155_v17 = vor.u32 %v1581_v15, %v1154_v14  ;;  %v1218_v18 = vld [vmem:[%s2511_s1 + $0x160] sm:$0xf]  ;;  %v1597_v19 = vld [vmem:[%s2511_s1 + $0x164] sm:$0xf0]  ;;  %v1082_v23 = vld [vmem:[%s2511_s1 + $0x50] sm:$0xf] }
   0x6   :  { %833 = vmatpush.bf16.msra.mxu2 %v1227_v8  ;;  %v1282_v20 = vld [vmem:[%s2511_s1 + $0x1e0] sm:$0xf]  ;;  %v1219_v21 = vor.u32 %v1597_v19, %v1218_v18  ;;  %v1613_v22 = vld [vmem:[%s2511_s1 + $0x1e4] sm:$0xf0]  ;;  %v1563_v24 = vld [vmem:[%s2511_s1 + $0x54] sm:$0xf0] }
   0x7   :  { %846 = vmatpush.bf16.msra.mxu3 %v1291_v12  ;;  %v1283_v25 = vor.u32 %v1613_v22, %v1282_v20  ;;  %v1146_v26 = vld [vmem:[%s2511_s1 + $0xd0] sm:$0xf]  ;;  %v1579_v27 = vld [vmem:[%s2511_s1 + $0xd4] sm:$0xf0]  ;;  %v1083_v29 = vor.u32 %v1563_v24, %v1082_v23  ;;  %v1074_v35 = vld [vmem:[%s2511_s1 + $0x40] sm:$0xf] }
   0x8   :  { %v1210_v28 = vld [vmem:[%s2511_s1 + $0x150] sm:$0xf]  ;;  %808 = vmatpush.bf16.msra.mxu0 %v1091_v16  ;;  %v1595_v30 = vld [vmem:[%s2511_s1 + $0x154] sm:$0xf0]  ;;  %v1147_v33 = vor.u32 %v1579_v27, %v1146_v26  ;;  %v1561_v36 = vld [vmem:[%s2511_s1 + $0x44] sm:$0xf0] }
   0x9   :  { %v1274_v31 = vld [vmem:[%s2511_s1 + $0x1d0] sm:$0xf]  ;;  %v1611_v32 = vld [vmem:[%s2511_s1 + $0x1d4] sm:$0xf0]  ;;  %821 = vmatpush.bf16.msra.mxu1 %v1155_v17  ;;  %v1211_v34 = vor.u32 %v1595_v30, %v1210_v28  ;;  %v1138_v37 = vld [vmem:[%s2511_s1 + $0xc0] sm:$0xf]  ;;  %v1075_v44 = vor.u32 %v1561_v36, %v1074_v35 }
   0xa   :  { %834 = vmatpush.bf16.msra.mxu2 %v1219_v21  ;;  %v1275_v38 = vor.u32 %v1611_v32, %v1274_v31  ;;  %v1577_v39 = vld [vmem:[%s2511_s1 + $0xc4] sm:$0xf0]  ;;  %v1202_v40 = vld [vmem:[%s2511_s1 + $0x140] sm:$0xf]  ;;  %v1066_v47 = vld [vmem:[%s2511_s1 + $0x30] sm:$0xf] }
   0xb   :  { %847 = vmatpush.bf16.msra.mxu3 %v1283_v25  ;;  %v1593_v41 = vld [vmem:[%s2511_s1 + $0x144] sm:$0xf0]  ;;  %v1266_v42 = vld [vmem:[%s2511_s1 + $0x1c0] sm:$0xf]  ;;  %v1139_v45 = vor.u32 %v1577_v39, %v1138_v37  ;;  %v1559_v48 = vld [vmem:[%s2511_s1 + $0x34] sm:$0xf0] }
   0xc   :  { %v1609_v43 = vld [vmem:[%s2511_s1 + $0x1c4] sm:$0xf0]  ;;  %809 = vmatpush.bf16.msra.mxu0 %v1083_v29  ;;  %v1203_v46 = vor.u32 %v1593_v41, %v1202_v40  ;;  %v1130_v49 = vld [vmem:[%s2511_s1 + $0xb0] sm:$0xf]  ;;  %v1575_v51 = vld [vmem:[%s2511_s1 + $0xb4] sm:$0xf0]  ;;  %v1067_v56 = vor.u32 %v1559_v48, %v1066_v47 }
   0xd   :  { %822 = vmatpush.bf16.msra.mxu1 %v1147_v33  ;;  %v1267_v50 = vor.u32 %v1609_v43, %v1266_v42  ;;  %v1194_v52 = vld [vmem:[%s2511_s1 + $0x130] sm:$0xf]  ;;  %v1591_v53 = vld [vmem:[%s2511_s1 + $0x134] sm:$0xf0]  ;;  %v1131_v57 = vor.u32 %v1575_v51, %v1130_v49  ;;  %v1058_v59 = vld [vmem:[%s2511_s1 + $0x20] sm:$0xf] }
   0xe   :  { %835 = vmatpush.bf16.msra.mxu2 %v1211_v34  ;;  %v1258_v54 = vld [vmem:[%s2511_s1 + $0x1b0] sm:$0xf]  ;;  %v1607_v55 = vld [vmem:[%s2511_s1 + $0x1b4] sm:$0xf0]  ;;  %v1195_v58 = vor.u32 %v1591_v53, %v1194_v52  ;;  %v1557_v60 = vld [vmem:[%s2511_s1 + $0x24] sm:$0xf0] }
   0xf   :  { %848 = vmatpush.bf16.msra.mxu3 %v1275_v38  ;;  %v1122_v61 = vld [vmem:[%s2511_s1 + $0xa0] sm:$0xf]  ;;  %v1259_v62 = vor.u32 %v1607_v55, %v1258_v54  ;;  %v1573_v63 = vld [vmem:[%s2511_s1 + $0xa4] sm:$0xf0]  ;;  %v1059_v4 = vor.u32 %v1557_v60, %v1058_v59  ;;  %v1050_v7 = vld [vmem:[%s2511_s1 + $0x10] sm:$0xf] }
  0x10   :  { %810 = vmatpush.bf16.msra.mxu0 %v1075_v44  ;;  %v1186_v0 = vld [vmem:[%s2511_s1 + $0x120] sm:$0xf]  ;;  %v1589_v1 = vld [vmem:[%s2511_s1 + $0x124] sm:$0xf0]  ;;  %v1123_v5 = vor.u32 %v1573_v63, %v1122_v61  ;;  %v1555_v8 = vld [vmem:[%s2511_s1 + $0x14] sm:$0xf0] }
  0x11   :  { %823 = vmatpush.bf16.msra.mxu1 %v1139_v45  ;;  %v1250_v2 = vld [vmem:[%s2511_s1 + $0x1a0] sm:$0xf]  ;;  %v1605_v3 = vld [vmem:[%s2511_s1 + $0x1a4] sm:$0xf0]  ;;  %v1187_v6 = vor.u32 %v1589_v1, %v1186_v0  ;;  %v1114_v9 = vld [vmem:[%s2511_s1 + $0x90] sm:$0xf]  ;;  %v1051_v16 = vor.u32 %v1555_v8, %v1050_v7 }
  0x12   :  { %836 = vmatpush.bf16.msra.mxu2 %v1203_v46  ;;  %v1251_v10 = vor.u32 %v1605_v3, %v1250_v2  ;;  %v1571_v11 = vld [vmem:[%s2511_s1 + $0x94] sm:$0xf0]  ;;  %v1178_v12 = vld [vmem:[%s2511_s1 + $0x110] sm:$0xf]  ;;  %v1042_v17 = vld [vmem:[%s2511_s1] sm:$0xf] }
  0x13   :  { %849 = vmatpush.bf16.msra.mxu3 %v1267_v50  ;;  %v1587_v13 = vld [vmem:[%s2511_s1 + $0x114] sm:$0xf0]  ;;  %v1242_v14 = vld [vmem:[%s2511_s1 + $0x190] sm:$0xf]  ;;  %v1553_v18 = vld [vmem:[%s2511_s1 + $0x4] sm:$0xf0]  ;;  %v1115_v19 = vor.u32 %v1571_v11, %v1114_v9 }
  0x14   :  { %811 = vmatpush.bf16.msra.mxu0 %v1067_v56  ;;  %v1603_v15 = vld [vmem:[%s2511_s1 + $0x194] sm:$0xf0]  ;;  %v1179_v20 = vor.u32 %v1587_v13, %v1178_v12  ;;  %v1106_v21 = vld [vmem:[%s2511_s1 + $0x80] sm:$0xf]  ;;  %v1569_v22 = vld [vmem:[%s2511_s1 + $0x84] sm:$0xf0]  ;;  %v1043_v31 = vor.u32 %v1553_v18, %v1042_v17 }
  0x15   :  { %824 = vmatpush.bf16.msra.mxu1 %v1131_v57  ;;  %v1170_v23 = vld [vmem:[%s2511_s1 + $0x100] sm:$0xf]  ;;  %v1243_v24 = vor.u32 %v1603_v15, %v1242_v14  ;;  %v1585_v25 = vld [vmem:[%s2511_s1 + $0x104] sm:$0xf0]  ;;  %v1354_v28 = vld [vmem:[%s2511_s1 + $0x270] sm:$0xf]  ;;  %v1107_v35 = vor.u32 %v1569_v22, %v1106_v21 }
  0x16   :  { %837 = vmatpush.bf16.msra.mxu2 %v1195_v58  ;;  %v1234_v26 = vld [vmem:[%s2511_s1 + $0x180] sm:$0xf]  ;;  %v1601_v27 = vld [vmem:[%s2511_s1 + $0x184] sm:$0xf0]  ;;  %v1631_v29 = vld [vmem:[%s2511_s1 + $0x274] sm:$0xf0]  ;;  %v1171_v36 = vor.u32 %v1585_v25, %v1170_v23 }
  0x17   :  { %850 = vmatpush.bf16.msra.mxu3 %v1259_v62  ;;  %v1418_v30 = vld [vmem:[%s2511_s1 + $0x2f0] sm:$0xf]  ;;  %v1647_v32 = vld [vmem:[%s2511_s1 + $0x2f4] sm:$0xf0]  ;;  %v1235_v39 = vor.u32 %v1601_v27, %v1234_v26  ;;  %v1355_v40 = vor.u32 %v1631_v29, %v1354_v28  ;;  %v1346_v43 = vld [vmem:[%s2511_s1 + $0x260] sm:$0xf] }
  0x18   :  { %812 = vmatpush.bf16.msra.mxu0 %v1059_v4  ;;  %v1482_v33 = vld [vmem:[%s2511_s1 + $0x370] sm:$0xf]  ;;  %v1663_v34 = vld [vmem:[%s2511_s1 + $0x374] sm:$0xf0]  ;;  %v1419_v41 = vor.u32 %v1647_v32, %v1418_v30  ;;  %v1629_v44 = vld [vmem:[%s2511_s1 + $0x264] sm:$0xf0] }
  0x19   :  { %825 = vmatpush.bf16.msra.mxu1 %v1123_v5  ;;  %v1546_v37 = vld [vmem:[%s2511_s1 + $0x3f0] sm:$0xf]  ;;  %v1679_v38 = vld [vmem:[%s2511_s1 + $0x3f4] sm:$0xf0]  ;;  %v1483_v42 = vor.u32 %v1663_v34, %v1482_v33  ;;  %v1410_v45 = vld [vmem:[%s2511_s1 + $0x2e0] sm:$0xf]  ;;  %v1347_v52 = vor.u32 %v1629_v44, %v1346_v43 }
  0x1a   :  { %838 = vmatpush.bf16.msra.mxu2 %v1187_v6  ;;  %v1547_v46 = vor.u32 %v1679_v38, %v1546_v37  ;;  %v1645_v47 = vld [vmem:[%s2511_s1 + $0x2e4] sm:$0xf0]  ;;  %v1474_v48 = vld [vmem:[%s2511_s1 + $0x360] sm:$0xf]  ;;  %v1338_v53 = vld [vmem:[%s2511_s1 + $0x250] sm:$0xf] }
  0x1b   :  { %851 = vmatpush.bf16.msra.mxu3 %v1251_v10  ;;  %v1661_v49 = vld [vmem:[%s2511_s1 + $0x364] sm:$0xf0]  ;;  %v1538_v50 = vld [vmem:[%s2511_s1 + $0x3e0] sm:$0xf]  ;;  %v1627_v54 = vld [vmem:[%s2511_s1 + $0x254] sm:$0xf0]  ;;  %v1411_v55 = vor.u32 %v1645_v47, %v1410_v45 }
  0x1c   :  { %813 = vmatpush.bf16.msra.mxu0 %v1051_v16  ;;  %v1677_v51 = vld [vmem:[%s2511_s1 + $0x3e4] sm:$0xf0]  ;;  %v1475_v56 = vor.u32 %v1661_v49, %v1474_v48  ;;  %v1402_v57 = vld [vmem:[%s2511_s1 + $0x2d0] sm:$0xf]  ;;  %v1643_v58 = vld [vmem:[%s2511_s1 + $0x2d4] sm:$0xf0]  ;;  %v1339_v1 = vor.u32 %v1627_v54, %v1338_v53 }
  0x1d   :  { %826 = vmatpush.bf16.msra.mxu1 %v1115_v19  ;;  %v20_v59 = vld [vmem:[%s2512_s0] sm:$0xff]  ;;  %v1539_v60 = vor.u32 %v1677_v51, %v1538_v50  ;;  %v1466_v61 = vld [vmem:[%s2511_s1 + $0x350] sm:$0xf]  ;;  %v1659_v62 = vld [vmem:[%s2511_s1 + $0x354] sm:$0xf0]  ;;  %v1403_v2 = vor.u32 %v1643_v58, %v1402_v57 }
  0x1e   :  { %839 = vmatpush.bf16.msra.mxu2 %v1179_v20  ;;  %150 = vst [vmem:[#allocation1] ss:$9 sm:$0xff] %v20_v59  ;;  %v1530_v63 = vld [vmem:[%s2511_s1 + $0x3d0] sm:$0xf]  ;;  %v1675_v0 = vld [vmem:[%s2511_s1 + $0x3d4] sm:$0xf0]  ;;  %v1467_v3 = vor.u32 %v1659_v62, %v1466_v61 }
  0x1f   :  { %852 = vmatpush.bf16.msra.mxu3 %v1243_v24  ;;  %v1330_v4 = vld [vmem:[%s2511_s1 + $0x240] sm:$0xf]  ;;  %v1625_v5 = vld [vmem:[%s2511_s1 + $0x244] sm:$0xf0]  ;;  %v1531_v7 = vor.u32 %v1675_v0, %v1530_v63  ;;  %v1322_v13 = vld [vmem:[%s2511_s1 + $0x230] sm:$0xf] }
  0x20   :  { %814 = vmatpush.bf16.msra.mxu0 %v1043_v31  ;;  %v1394_v6 = vld [vmem:[%s2511_s1 + $0x2c0] sm:$0xf]  ;;  %v1641_v8 = vld [vmem:[%s2511_s1 + $0x2c4] sm:$0xf0]  ;;  %v1331_v14 = vor.u32 %v1625_v5, %v1330_v4  ;;  %v1623_v15 = vld [vmem:[%s2511_s1 + $0x234] sm:$0xf0] }
  0x21   :  { %827 = vmatpush.bf16.msra.mxu1 %v1107_v35  ;;  %v1458_v9 = vld [vmem:[%s2511_s1 + $0x340] sm:$0xf]  ;;  %v1657_v10 = vld [vmem:[%s2511_s1 + $0x344] sm:$0xf0]  ;;  %v1386_v16 = vld [vmem:[%s2511_s1 + $0x2b0] sm:$0xf]  ;;  %v1395_v18 = vor.u32 %v1641_v8, %v1394_v6  ;;  %v1323_v29 = vor.u32 %v1623_v15, %v1322_v13 }
  0x22   :  { %840 = vmatpush.bf16.msra.mxu2 %v1171_v36  ;;  %v1522_v11 = vld [vmem:[%s2511_s1 + $0x3c0] sm:$0xf]  ;;  %v1673_v12 = vld [vmem:[%s2511_s1 + $0x3c4] sm:$0xf0]  ;;  %v1639_v17 = vld [vmem:[%s2511_s1 + $0x2b4] sm:$0xf0]  ;;  %v1459_v19 = vor.u32 %v1657_v10, %v1458_v9 }
  0x23   :  { %853 = vmatpush.bf16.msra.mxu3 %v1235_v39  ;;  %v1523_v23 = vor.u32 %v1673_v12, %v1522_v11  ;;  %v1450_v24 = vld [vmem:[%s2511_s1 + $0x330] sm:$0xf]  ;;  %v1655_v25 = vld [vmem:[%s2511_s1 + $0x334] sm:$0xf0]  ;;  %v1387_v30 = vor.u32 %v1639_v17, %v1386_v16  ;;  %v1314_v32 = vld [vmem:[%s2511_s1 + $0x220] sm:$0xf] }
  0x24   :  { %859 = vmatpush.bf16.msrb.mxu0 %v1355_v40  ;;  %v1514_v27 = vld [vmem:[%s2511_s1 + $0x3b0] sm:$0xf]  ;;  %v1671_v28 = vld [vmem:[%s2511_s1 + $0x3b4] sm:$0xf0]  ;;  %v1451_v31 = vor.u32 %v1655_v25, %v1450_v24  ;;  %v1621_v33 = vld [vmem:[%s2511_s1 + $0x224] sm:$0xf0] }
  0x25   :  { %872 = vmatpush.bf16.msrb.mxu1 %v1419_v41  ;;  %v2005_v20 = vld [vmem:[#allocation1 + $0x12] sm:$0xff]  ;;  %v2007_v21 = vld [vmem:[#allocation1] sm:$0xff]  ;;  %v2018_v26 = vld [vmem:[#allocation1 + $0x9] sm:$0xff]  ;;  %v1515_v35 = vor.u32 %v1671_v28, %v1514_v27  ;;  %v1315_v41 = vor.u32 %v1621_v33, %v1314_v32 }
  0x26   :  { %885 = vmatpush.bf16.msrb.mxu2 %v1483_v42  ;;  %v2009_v22 = vld [vmem:[#allocation1 + $0x1b] sm:$0xff]  ;;  %815 = vmatmul.bf16.vlgmr.msra.gmra.mxu0 %v2007_v21  ;;  %v1637_v36 = vld [vmem:[%s2511_s1 + $0x2a4] sm:$0xf0]  ;;  %v1306_v44 = vld [vmem:[%s2511_s1 + $0x210] sm:$0xf] }
  0x27   :  { %898 = vmatpush.bf16.msrb.mxu3 %v1547_v46  ;;  %841 = vmatmul.bf16.vlgmr.msra.gmra.mxu2 %v2005_v20  ;;  %v1378_v34 = vld [vmem:[%s2511_s1 + $0x2a0] sm:$0xf]  ;;  %v1653_v38 = vld [vmem:[%s2511_s1 + $0x324] sm:$0xf0]  ;;  %v1619_v45 = vld [vmem:[%s2511_s1 + $0x214] sm:$0xf0] }
  0x28   :  { %860 = vmatpush.bf16.msrb.mxu0 %v1347_v52  ;;  %854 = vmatmul.bf16.vlgmr.msra.gmra.mxu3 %v2009_v22  ;;  %v1442_v37 = vld [vmem:[%s2511_s1 + $0x320] sm:$0xf]  ;;  %v1669_v40 = vld [vmem:[%s2511_s1 + $0x3a4] sm:$0xf0]  ;;  %v1379_v42 = vor.u32 %v1637_v36, %v1378_v34  ;;  %v1370_v46 = vld [vmem:[%s2511_s1 + $0x290] sm:$0xf]  ;;  %v1307_v53 = vor.u32 %v1619_v45, %v1306_v44 }
  0x29   :  { %873 = vmatpush.bf16.msrb.mxu1 %v1411_v55  ;;  %v1506_v39 = vld [vmem:[%s2511_s1 + $0x3a0] sm:$0xf]  ;;  %v1443_v43 = vor.u32 %v1653_v38, %v1442_v37  ;;  %v1635_v48 = vld [vmem:[%s2511_s1 + $0x294] sm:$0xf0]  ;;  %v1434_v49 = vld [vmem:[%s2511_s1 + $0x310] sm:$0xf] }
  0x2a   :  { %886 = vmatpush.bf16.msrb.mxu2 %v1475_v56  ;;  %828 = vmatmul.bf16.vlgmr.msra.gmra.mxu1 %v2018_v26  ;;  %v1507_v47 = vor.u32 %v1669_v40, %v1506_v39  ;;  %v1651_v50 = vld [vmem:[%s2511_s1 + $0x314] sm:$0xf0]  ;;  %v1498_v51 = vld [vmem:[%s2511_s1 + $0x390] sm:$0xf]  ;;  %v1298_v54 = vld [vmem:[%s2511_s1 + $0x200] sm:$0xf]  ;;  %v1371_v56 = vor.u32 %v1635_v48, %v1370_v46 }
  0x2b   :  { %899 = vmatpush.bf16.msrb.mxu3 %v1539_v60  ;;  %v1667_v52 = vld [vmem:[%s2511_s1 + $0x394] sm:$0xf0]  ;;  %v1617_v55 = vld [vmem:[%s2511_s1 + $0x204] sm:$0xf0]  ;;  %v1435_v57 = vor.u32 %v1651_v50, %v1434_v49  ;;  %v1362_v58 = vld [vmem:[%s2511_s1 + $0x280] sm:$0xf] }
  0x2c   :  { %861 = vmatpush.bf16.msrb.mxu0 %v1339_v1  ;;  %v1633_v59 = vld [vmem:[%s2511_s1 + $0x284] sm:$0xf0]  ;;  %v1426_v60 = vld [vmem:[%s2511_s1 + $0x300] sm:$0xf]  ;;  %v1499_v61 = vor.u32 %v1667_v52, %v1498_v51  ;;  %v1566_v1 = vld [vmem:[%s2511_s1 + $0x74] sm:$0xf]  ;;  %v1299_v4 = vor.u32 %v1617_v55, %v1298_v54 }
  0x2d   :  { %874 = vmatpush.bf16.msrb.mxu1 %v1403_v2  ;;  %v1649_v62 = vld [vmem:[%s2511_s1 + $0x304] sm:$0xf0]  ;;  %v1490_v63 = vld [vmem:[%s2511_s1 + $0x380] sm:$0xf]  ;;  %v1100_v2 = vld [vmem:[%s2511_s1 + $0x78] sm:$0xf0]  ;;  %v1363_v8 = vor.u32 %v1633_v59, %v1362_v58 }
  0x2e   :  { %887 = vmatpush.bf16.msrb.mxu2 %v1467_v3  ;;  %v1665_v0 = vld [vmem:[%s2511_s1 + $0x384] sm:$0xf0]  ;;  %v1582_v3 = vld [vmem:[%s2511_s1 + $0xf4] sm:$0xf]  ;;  %v1164_v5 = vld [vmem:[%s2511_s1 + $0xf8] sm:$0xf0]  ;;  %v1427_v9 = vor.u32 %v1649_v62, %v1426_v60  ;;  %v1103_v13 = vor.u32 %v1566_v1, %v1100_v2 }
  0x2f   :  { %900 = vmatpush.bf16.msrb.mxu3 %v1531_v7  ;;  %v1598_v6 = vld [vmem:[%s2511_s1 + $0x174] sm:$0xf]  ;;  %v1228_v7 = vld [vmem:[%s2511_s1 + $0x178] sm:$0xf0]  ;;  %v1491_v12 = vor.u32 %v1665_v0, %v1490_v63  ;;  %v1564_v16 = vld [vmem:[%s2511_s1 + $0x64] sm:$0xf] }
  0x30   :  { %862 = vmatpush.bf16.msrb.mxu0 %v1331_v14  ;;  %v1614_v10 = vld [vmem:[%s2511_s1 + $0x1f4] sm:$0xf]  ;;  %v1292_v11 = vld [vmem:[%s2511_s1 + $0x1f8] sm:$0xf0]  ;;  %v1167_v14 = vor.u32 %v1582_v3, %v1164_v5  ;;  %v1231_v15 = vor.u32 %v1598_v6, %v1228_v7  ;;  %v1092_v17 = vld [vmem:[%s2511_s1 + $0x68] sm:$0xf0] }
  0x31   :  { %875 = vmatpush.bf16.msrb.mxu1 %v1395_v18  ;;  %v1580_v18 = vld [vmem:[%s2511_s1 + $0xe4] sm:$0xf]  ;;  %v1220_v25 = vld [vmem:[%s2511_s1 + $0x168] sm:$0xf0]  ;;  %v1562_v33 = vld [vmem:[%s2511_s1 + $0x54] sm:$0xf] }
  0x32   :  { %888 = vmatpush.bf16.msrb.mxu2 %v1459_v19  ;;  %v1295_v19 = vor.u32 %v1614_v10, %v1292_v11  ;;  %v1596_v24 = vld [vmem:[%s2511_s1 + $0x164] sm:$0xf]  ;;  %v1284_v28 = vld [vmem:[%s2511_s1 + $0x1e8] sm:$0xf0]  ;;  %v1084_v36 = vld [vmem:[%s2511_s1 + $0x58] sm:$0xf0] }
  0x33   :  { %901 = vmatpush.bf16.msrb.mxu3 %v1523_v23  ;;  %v1156_v23 = vld [vmem:[%s2511_s1 + $0xe8] sm:$0xf0]  ;;  %v1612_v27 = vld [vmem:[%s2511_s1 + $0x1e4] sm:$0xf]  ;;  %v1578_v37 = vld [vmem:[%s2511_s1 + $0xd4] sm:$0xf]  ;;  %v1087_v45 = vor.u32 %v1562_v33, %v1084_v36 }
  0x34   :  { %863 = vmatpush.bf16.msrb.mxu0 %v1323_v29  ;;  %v2149_v29 = vld [vmem:[#allocation1 + $0x36] sm:$0xff]  ;;  %v2153_v32 = vld [vmem:[#allocation1 + $0x3f] sm:$0xff]  ;;  %v1159_v34 = vor.u32 %v1580_v18, %v1156_v23  ;;  %v2164_v38 = vld [vmem:[#allocation1 + $0x2d] sm:$0xff]  ;;  %v1287_v39 = vor.u32 %v1612_v27, %v1284_v28 }
  0x35   :  { %876 = vmatpush.bf16.msrb.mxu1 %v1387_v30  ;;  %v1095_v30 = vor.u32 %v1564_v16, %v1092_v17  ;;  %v1148_v40 = vld [vmem:[%s2511_s1 + $0xd8] sm:$0xf0]  ;;  %v1560_v48 = vld [vmem:[%s2511_s1 + $0x44] sm:$0xf]  ;;  %v1076_v49 = vld [vmem:[%s2511_s1 + $0x48] sm:$0xf0] }
  0x36   :  { %889 = vmatpush.bf16.msrb.mxu2 %v1451_v31  ;;  %v2151_v31 = vld [vmem:[#allocation1 + $0x24] sm:$0xff]  ;;  %v1276_v44 = vld [vmem:[%s2511_s1 + $0x1d8] sm:$0xf0]  ;;  %v1151_v46 = vor.u32 %v1578_v37, %v1148_v40  ;;  %v1140_v52 = vld [vmem:[%s2511_s1 + $0xc8] sm:$0xf0] }
  0x37   :  { %902 = vmatpush.bf16.msrb.mxu3 %v1515_v35  ;;  %v1223_v35 = vor.u32 %v1596_v24, %v1220_v25  ;;  %v1576_v50 = vld [vmem:[%s2511_s1 + $0xc4] sm:$0xf]  ;;  %v1204_v54 = vld [vmem:[%s2511_s1 + $0x148] sm:$0xf0]  ;;  %v1558_v60 = vld [vmem:[%s2511_s1 + $0x34] sm:$0xf] }
  0x38   :  { %864 = vmatpush.bf16.msrb.mxu0 %v1315_v41  ;;  %v1594_v41 = vld [vmem:[%s2511_s1 + $0x154] sm:$0xf]  ;;  %v1608_v55 = vld [vmem:[%s2511_s1 + $0x1c4] sm:$0xf]  ;;  %v1143_v58 = vor.u32 %v1576_v50, %v1140_v52  ;;  %v1132_v0 = vld [vmem:[%s2511_s1 + $0xb8] sm:$0xf0] }
  0x39   :  { %877 = vmatpush.bf16.msrb.mxu1 %v1379_v42  ;;  %v1212_v42 = vld [vmem:[%s2511_s1 + $0x158] sm:$0xf0]  ;;  %v1574_v62 = vld [vmem:[%s2511_s1 + $0xb4] sm:$0xf]  ;;  %v1572_v10 = vld [vmem:[%s2511_s1 + $0xa4] sm:$0xf] }
  0x3a   :  { %890 = vmatpush.bf16.msrb.mxu2 %v1443_v43  ;;  %v1610_v43 = vld [vmem:[%s2511_s1 + $0x1d4] sm:$0xf]  ;;  %v1196_v2 = vld [vmem:[%s2511_s1 + $0x138] sm:$0xf0]  ;;  %v1135_v6 = vor.u32 %v1574_v62, %v1132_v0  ;;  %v1252_v16 = vld [vmem:[%s2511_s1 + $0x1a8] sm:$0xf0] }
  0x3b   :  { %903 = vmatpush.bf16.msrb.mxu3 %v1507_v47  ;;  %v1215_v47 = vor.u32 %v1594_v41, %v1212_v42  ;;  %v1279_v51 = vor.u32 %v1610_v43, %v1276_v44  ;;  %v1590_v1 = vld [vmem:[%s2511_s1 + $0x134] sm:$0xf]  ;;  %v1052_v24 = vld [vmem:[%s2511_s1 + $0x18] sm:$0xf0]  ;;  %v1552_v37 = vld [vmem:[%s2511_s1 + $0x4] sm:$0xf] }
  0x3c   :  { %865 = vmatpush.bf16.msrb.mxu0 %v1307_v53  ;;  %v1592_v53 = vld [vmem:[%s2511_s1 + $0x144] sm:$0xf]  ;;  %v1606_v3 = vld [vmem:[%s2511_s1 + $0x1b4] sm:$0xf]  ;;  %v1199_v7 = vor.u32 %v1590_v1, %v1196_v2  ;;  %v1116_v28 = vld [vmem:[%s2511_s1 + $0x98] sm:$0xf0] }
  0x3d   :  { %878 = vmatpush.bf16.msrb.mxu1 %v1371_v56  ;;  %v1268_v56 = vld [vmem:[%s2511_s1 + $0x1c8] sm:$0xf0]  ;;  %v1207_v59 = vor.u32 %v1592_v53, %v1204_v54  ;;  %v1554_v23 = vld [vmem:[%s2511_s1 + $0x14] sm:$0xf]  ;;  %v1180_v33 = vld [vmem:[%s2511_s1 + $0x118] sm:$0xf0] }
  0x3e   :  { %891 = vmatpush.bf16.msrb.mxu2 %v1435_v57  ;;  %v1079_v57 = vor.u32 %v1560_v48, %v1076_v49  ;;  %v1271_v63 = vor.u32 %v1608_v55, %v1268_v56  ;;  %v1570_v25 = vld [vmem:[%s2511_s1 + $0x94] sm:$0xf]  ;;  %v1055_v36 = vor.u32 %v1554_v23, %v1052_v24  ;;  %v1568_v42 = vld [vmem:[%s2511_s1 + $0x84] sm:$0xf]  ;;  %v1108_v43 = vld [vmem:[%s2511_s1 + $0x88] sm:$0xf0] }
  0x3f   :  { %904 = vmatpush.bf16.msrb.mxu3 %v1499_v61  ;;  %v1068_v61 = vld [vmem:[%s2511_s1 + $0x38] sm:$0xf0]  ;;  %v1119_v40 = vor.u32 %v1570_v25, %v1116_v28  ;;  %v1584_v44 = vld [vmem:[%s2511_s1 + $0x104] sm:$0xf]  ;;  %v1236_v48 = vld [vmem:[%s2511_s1 + $0x188] sm:$0xf0]  ;;  %v1111_v56 = vor.u32 %v1568_v42, %v1108_v43 }
  0x40   :  { %866 = vmatpush.bf16.msrb.mxu0 %v1299_v4  ;;  %v1260_v4 = vld [vmem:[%s2511_s1 + $0x1b8] sm:$0xf0]  ;;  %v1071_v5 = vor.u32 %v1558_v60, %v1068_v61  ;;  %v1630_v49 = vld [vmem:[%s2511_s1 + $0x274] sm:$0xf]  ;;  %v1628_v0 = vld [vmem:[%s2511_s1 + $0x264] sm:$0xf] }
  0x41   :  { %879 = vmatpush.bf16.msrb.mxu1 %v1363_v8  ;;  %v1556_v8 = vld [vmem:[%s2511_s1 + $0x24] sm:$0xf]  ;;  %v1263_v11 = vor.u32 %v1606_v3, %v1260_v4  ;;  %v1356_v50 = vld [vmem:[%s2511_s1 + $0x278] sm:$0xf0]  ;;  %v1662_v54 = vld [vmem:[%s2511_s1 + $0x374] sm:$0xf] }
  0x42   :  { %892 = vmatpush.bf16.msrb.mxu2 %v1427_v9  ;;  %v1060_v9 = vld [vmem:[%s2511_s1 + $0x28] sm:$0xf0]  ;;  %v1420_v53 = vld [vmem:[%s2511_s1 + $0x2f8] sm:$0xf0]  ;;  %v1359_v61 = vor.u32 %v1630_v49, %v1356_v50  ;;  %v1644_v2 = vld [vmem:[%s2511_s1 + $0x2e4] sm:$0xf] }
  0x43   :  { %905 = vmatpush.bf16.msrb.mxu3 %v1491_v12  ;;  %867 = vmatmul.bf16.vlgmr.msrb.gmra.mxu0 %v2151_v31  ;;  %v1124_v12 = vld [vmem:[%s2511_s1 + $0xa8] sm:$0xf0]  ;;  %v1063_v17 = vor.u32 %v1556_v8, %v1060_v9  ;;  %v1484_v55 = vld [vmem:[%s2511_s1 + $0x378] sm:$0xf0]  ;;  %v1638_v42 = vld [vmem:[%s2511_s1 + $0x2b4] sm:$0xf] }
  0x44   :  { %911 = vmatpush.bf16.msra.mxu0 %v1103_v13  ;;  %880 = vmatmul.bf16.vlgmr.msrb.gmra.mxu1 %v2164_v38  ;;  %v1588_v13 = vld [vmem:[%s2511_s1 + $0x124] sm:$0xf]  ;;  %v1127_v18 = vor.u32 %v1572_v10, %v1124_v12  ;;  %v1348_v1 = vld [vmem:[%s2511_s1 + $0x268] sm:$0xf0]  ;;  %v1626_v12 = vld [vmem:[%s2511_s1 + $0x254] sm:$0xf] }
  0x45   :  { %924 = vmatpush.bf16.msra.mxu1 %v1167_v14  ;;  %893 = vmatmul.bf16.vlgmr.msrb.gmra.mxu2 %v2149_v29  ;;  %v1188_v14 = vld [vmem:[%s2511_s1 + $0x128] sm:$0xf0]  ;;  %v1351_v9 = vor.u32 %v1628_v0, %v1348_v1  ;;  %v1618_v0 = vld [vmem:[%s2511_s1 + $0x214] sm:$0xf]  ;;  %v1308_v1 = vld [vmem:[%s2511_s1 + $0x218] sm:$0xf0] }
  0x46   :  { %937 = vmatpush.bf16.msra.mxu2 %v1231_v15  ;;  %906 = vmatmul.bf16.vlgmr.msrb.gmra.mxu3 %v2153_v32  ;;  %v1604_v15 = vld [vmem:[%s2511_s1 + $0x1a4] sm:$0xf]  ;;  %v1412_v4 = vld [vmem:[%s2511_s1 + $0x2e8] sm:$0xf0] }
  0x47   :  { %950 = vmatpush.bf16.msra.mxu3 %v1295_v19  ;;  %v1191_v19 = vor.u32 %v1588_v13, %v1188_v14  ;;  %v1255_v27 = vor.u32 %v1604_v15, %v1252_v16  ;;  %v1540_v8 = vld [vmem:[%s2511_s1 + $0x3e8] sm:$0xf0]  ;;  %v1415_v10 = vor.u32 %v1644_v2, %v1412_v4  ;;  %v1340_v13 = vld [vmem:[%s2511_s1 + $0x258] sm:$0xf0]  ;;  %v1642_v14 = vld [vmem:[%s2511_s1 + $0x2d4] sm:$0xf] }
  0x48   :  { %912 = vmatpush.bf16.msra.mxu0 %v1095_v30  ;;  %v1586_v30 = vld [vmem:[%s2511_s1 + $0x114] sm:$0xf]  ;;  %v1404_v16 = vld [vmem:[%s2511_s1 + $0x2d8] sm:$0xf0]  ;;  %v1343_v23 = vor.u32 %v1626_v12, %v1340_v13  ;;  %v1332_v28 = vld [vmem:[%s2511_s1 + $0x248] sm:$0xf0] }
  0x49   :  { %925 = vmatpush.bf16.msra.mxu1 %v1159_v34  ;;  %v1602_v34 = vld [vmem:[%s2511_s1 + $0x194] sm:$0xf]  ;;  %v1183_v41 = vor.u32 %v1586_v30, %v1180_v33  ;;  %v1407_v24 = vor.u32 %v1642_v14, %v1404_v16  ;;  %v1656_v30 = vld [vmem:[%s2511_s1 + $0x344] sm:$0xf]  ;;  %v1460_v33 = vld [vmem:[%s2511_s1 + $0x348] sm:$0xf0] }
  0x4a   :  { %938 = vmatpush.bf16.msra.mxu2 %v1223_v35  ;;  %v1244_v35 = vld [vmem:[%s2511_s1 + $0x198] sm:$0xf0]  ;;  %v1634_v2 = vld [vmem:[%s2511_s1 + $0x294] sm:$0xf]  ;;  %v1616_v12 = vld [vmem:[%s2511_s1 + $0x204] sm:$0xf] }
  0x4b   :  { %951 = vmatpush.bf16.msra.mxu3 %v1287_v39  ;;  %v1044_v39 = vld [vmem:[%s2511_s1 + $0x8] sm:$0xf0]  ;;  %v1372_v4 = vld [vmem:[%s2511_s1 + $0x298] sm:$0xf0]  ;;  %v1632_v14 = vld [vmem:[%s2511_s1 + $0x284] sm:$0xf] }
  0x4c   :  { %913 = vmatpush.bf16.msra.mxu0 %v1087_v45  ;;  %v1247_v45 = vor.u32 %v1602_v34, %v1244_v35  ;;  %v1047_v52 = vor.u32 %v1552_v37, %v1044_v39  ;;  %v1672_v34 = vld [vmem:[%s2511_s1 + $0x3c4] sm:$0xf]  ;;  %v1524_v35 = vld [vmem:[%s2511_s1 + $0x3c8] sm:$0xf0]  ;;  %v1463_v39 = vor.u32 %v1656_v30, %v1460_v33 }
  0x4d   :  { %926 = vmatpush.bf16.msra.mxu1 %v1151_v46  ;;  %v1172_v46 = vld [vmem:[%s2511_s1 + $0x108] sm:$0xf0]  ;;  %v1527_v43 = vor.u32 %v1672_v34, %v1524_v35 }
  0x4e   :  { %939 = vmatpush.bf16.msra.mxu2 %v1215_v47  ;;  %v1600_v47 = vld [vmem:[%s2511_s1 + $0x184] sm:$0xf]  ;;  %v1300_v13 = vld [vmem:[%s2511_s1 + $0x208] sm:$0xf0] }
  0x4f   :  { %952 = vmatpush.bf16.msra.mxu3 %v1279_v51  ;;  %v1646_v51 = vld [vmem:[%s2511_s1 + $0x2f4] sm:$0xf]  ;;  %v1239_v60 = vor.u32 %v1600_v47, %v1236_v48  ;;  %v1516_v48 = vld [vmem:[%s2511_s1 + $0x3b8] sm:$0xf0]  ;;  %v1364_v16 = vld [vmem:[%s2511_s1 + $0x288] sm:$0xf0] }
  0x50   :  { %914 = vmatpush.bf16.msra.mxu0 %v1079_v57  ;;  %v1175_v57 = vor.u32 %v1584_v44, %v1172_v46  ;;  %v1423_v62 = vor.u32 %v1646_v51, %v1420_v53  ;;  %v1388_v44 = vld [vmem:[%s2511_s1 + $0x2b8] sm:$0xf0]  ;;  %v1670_v47 = vld [vmem:[%s2511_s1 + $0x3b4] sm:$0xf]  ;;  %v1316_v53 = vld [vmem:[%s2511_s1 + $0x228] sm:$0xf0] }
  0x51   :  { %927 = vmatpush.bf16.msra.mxu1 %v1143_v58  ;;  %v1678_v58 = vld [vmem:[%s2511_s1 + $0x3f4] sm:$0xf]  ;;  %v1452_v46 = vld [vmem:[%s2511_s1 + $0x338] sm:$0xf0]  ;;  %v1391_v50 = vor.u32 %v1638_v42, %v1388_v44 }
  0x52   :  { %940 = vmatpush.bf16.msra.mxu2 %v1207_v59  ;;  %v1548_v59 = vld [vmem:[%s2511_s1 + $0x3f8] sm:$0xf0] }
  0x53   :  { %953 = vmatpush.bf16.msra.mxu3 %v1271_v63  ;;  %v1487_v63 = vor.u32 %v1662_v54, %v1484_v55  ;;  %v1551_v3 = vor.u32 %v1678_v58, %v1548_v59  ;;  %v1636_v54 = vld [vmem:[%s2511_s1 + $0x2a4] sm:$0xf]  ;;  %v1519_v55 = vor.u32 %v1670_v47, %v1516_v48  ;;  %v1444_v58 = vld [vmem:[%s2511_s1 + $0x328] sm:$0xf0]  ;;  %v1681_v48 = vmov 0.0  }
  0x54   :  { %915 = vmatpush.bf16.msra.mxu0 %v1071_v5  ;;  %v1660_v5 = vld [vmem:[%s2511_s1 + $0x364] sm:$0xf]  ;;  %18 = vst [vmem:[#allocation2] sm:$0xf] %v1681_v48 }
  0x55   :  { %928 = vmatpush.bf16.msra.mxu1 %v1135_v6  ;;  %v1476_v6 = vld [vmem:[%s2511_s1 + $0x368] sm:$0xf0]  ;;  %v1668_v59 = vld [vmem:[%s2511_s1 + $0x3a4] sm:$0xf] }
  0x56   :  { %941 = vmatpush.bf16.msra.mxu2 %v1199_v7  ;;  %v1676_v7 = vld [vmem:[%s2511_s1 + $0x3e4] sm:$0xf] }
  0x57   :  { %954 = vmatpush.bf16.msra.mxu3 %v1263_v11  ;;  %v1479_v11 = vor.u32 %v1660_v5, %v1476_v6  ;;  %v1543_v15 = vor.u32 %v1676_v7, %v1540_v8  ;;  %v1650_v5 = vld [vmem:[%s2511_s1 + $0x314] sm:$0xf]  ;;  %v1436_v6 = vld [vmem:[%s2511_s1 + $0x318] sm:$0xf0] }
  0x58   :  { %916 = vmatpush.bf16.msra.mxu0 %v1063_v17  ;;  %v1658_v17 = vld [vmem:[%s2511_s1 + $0x354] sm:$0xf]  ;;  %v1500_v8 = vld [vmem:[%s2511_s1 + $0x398] sm:$0xf0] }
  0x59   :  { %929 = vmatpush.bf16.msra.mxu1 %v1127_v18  ;;  %v1468_v18 = vld [vmem:[%s2511_s1 + $0x358] sm:$0xf0]  ;;  %v1666_v7 = vld [vmem:[%s2511_s1 + $0x394] sm:$0xf] }
  0x5a   :  { %942 = vmatpush.bf16.msra.mxu2 %v1191_v19  ;;  %v1674_v19 = vld [vmem:[%s2511_s1 + $0x3d4] sm:$0xf]  ;;  %v1471_v25 = vor.u32 %v1658_v17, %v1468_v18  ;;  %v1648_v17 = vld [vmem:[%s2511_s1 + $0x304] sm:$0xf]  ;;  %v1428_v18 = vld [vmem:[%s2511_s1 + $0x308] sm:$0xf0] }
  0x5b   :  { %955 = vmatpush.bf16.msra.mxu3 %v1255_v27  ;;  %v1624_v27 = vld [vmem:[%s2511_s1 + $0x244] sm:$0xf] }
  0x5c   :  { %917 = vmatpush.bf16.msra.mxu0 %v1055_v36  ;;  %v1335_v36 = vor.u32 %v1624_v27, %v1332_v28 }
  0x5d   :  { %930 = vmatpush.bf16.msra.mxu1 %v1119_v40  ;;  %v1622_v40 = vld [vmem:[%s2511_s1 + $0x234] sm:$0xf] }
  0x5e   :  { %943 = vmatpush.bf16.msra.mxu2 %v1183_v41  ;;  %v1324_v41 = vld [vmem:[%s2511_s1 + $0x238] sm:$0xf0] }
  0x5f   :  { %956 = vmatpush.bf16.msra.mxu3 %v1247_v45  ;;  %v1654_v45 = vld [vmem:[%s2511_s1 + $0x334] sm:$0xf]  ;;  %v1327_v49 = vor.u32 %v1622_v40, %v1324_v41 }
  0x60   :  { %918 = vmatpush.bf16.msra.mxu0 %v1047_v52  ;;  %v1455_v51 = vor.u32 %v1654_v45, %v1452_v46  ;;  %v1620_v52 = vld [vmem:[%s2511_s1 + $0x224] sm:$0xf] }
  0x61   :  { %931 = vmatpush.bf16.msra.mxu1 %v1111_v56  ;;  %v1380_v56 = vld [vmem:[%s2511_s1 + $0x2a8] sm:$0xf0] }
  0x62   :  { %944 = vmatpush.bf16.msra.mxu2 %v1175_v57  ;;  %v1652_v57 = vld [vmem:[%s2511_s1 + $0x324] sm:$0xf] }
  0x63   :  { %957 = vmatpush.bf16.msra.mxu3 %v1239_v60  ;;  %919 = vmatmul.bf16.vlgmr.msra.gmra.mxu0 %v2007_v21  ;;  %v1640_v21 = vld [vmem:[%s2511_s1 + $0x2c4] sm:$0xf]  ;;  %v1508_v60 = vld [vmem:[%s2511_s1 + $0x3a8] sm:$0xf0] }
  0x64   :  { %963 = vmatpush.bf16.msrb.mxu0 %v1359_v61  ;;  %932 = vmatmul.bf16.vlgmr.msra.gmra.mxu1 %v2018_v26  ;;  %v1396_v26 = vld [vmem:[%s2511_s1 + $0x2c8] sm:$0xf0]  ;;  %v1319_v61 = vor.u32 %v1620_v52, %v1316_v53 }
  0x65   :  { %976 = vmatpush.bf16.msrb.mxu1 %v1423_v62  ;;  %945 = vmatmul.bf16.vlgmr.msra.gmra.mxu2 %v2005_v20  ;;  %v1532_v20 = vld [vmem:[%s2511_s1 + $0x3d8] sm:$0xf0]  ;;  %v1399_v37 = vor.u32 %v1640_v21, %v1396_v26  ;;  %v1383_v62 = vor.u32 %v1636_v54, %v1380_v56 }
  0x66   :  { %989 = vmatpush.bf16.msrb.mxu2 %v1487_v63  ;;  %958 = vmatmul.bf16.vlgmr.msra.gmra.mxu3 %v2009_v22  ;;  %v1535_v22 = vor.u32 %v1674_v19, %v1532_v20  ;;  %v1447_v63 = vor.u32 %v1652_v57, %v1444_v58  ;;  %v1664_v19 = vld [vmem:[%s2511_s1 + $0x384] sm:$0xf]  ;;  %v1492_v20 = vld [vmem:[%s2511_s1 + $0x388] sm:$0xf0] }
  0x67   :  { %1002 = vmatpush.bf16.msrb.mxu3 %v1551_v3  ;;  %v1511_v3 = vor.u32 %v1668_v59, %v1508_v60  ;;  %v1495_v27 = vor.u32 %v1664_v19, %v1492_v20 }
  0x68   :  { %964 = vmatpush.bf16.msrb.mxu0 %v1351_v9  ;;  %v1311_v9 = vor.u32 %v1618_v0, %v1308_v1 }
  0x69   :  { %977 = vmatpush.bf16.msrb.mxu1 %v1415_v10  ;;  %v1375_v10 = vor.u32 %v1634_v2, %v1372_v4 }
  0x6a   :  { %990 = vmatpush.bf16.msrb.mxu2 %v1479_v11  ;;  %v1439_v11 = vor.u32 %v1650_v5, %v1436_v6  ;;  %v1027_v5 = vld [vmem:[%s2513_s2] sm:$0x3] }
  0x6b   :  { %1003 = vmatpush.bf16.msrb.mxu3 %v1543_v15  ;;  %v1503_v15 = vor.u32 %v1666_v7, %v1500_v8  ;;  %v19_v7 = vld [vmem:[#allocation2] sm:$0xf] }
  0x6c   :  { %965 = vmatpush.bf16.msrb.mxu0 %v1343_v23  ;;  %v1303_v23 = vor.u32 %v1616_v12, %v1300_v13 }
  0x6d   :  { %978 = vmatpush.bf16.msrb.mxu1 %v1407_v24  ;;  %v1367_v24 = vor.u32 %v1632_v14, %v1364_v16  ;;  %v1029_v14 = vperm.slane %v1027_v5, 0 }
  0x6e   :  { %991 = vmatpush.bf16.msrb.mxu2 %v1471_v25  ;;  %v1431_v25 = vor.u32 %v1648_v17, %v1428_v18 }
  0x6f   :  { %1004 = vmatpush.bf16.msrb.mxu3 %v1535_v22 }
  0x70   :  { %966 = vmatpush.bf16.msrb.mxu0 %v1335_v36 }
  0x71   :  { %979 = vmatpush.bf16.msrb.mxu1 %v1399_v37 }
  0x72   :  { %992 = vmatpush.bf16.msrb.mxu2 %v1463_v39 }
  0x73   :  { %1005 = vmatpush.bf16.msrb.mxu3 %v1527_v43 }
  0x74   :  { %967 = vmatpush.bf16.msrb.mxu0 %v1327_v49 }
  0x75   :  { %980 = vmatpush.bf16.msrb.mxu1 %v1391_v50 }
  0x76   :  { %993 = vmatpush.bf16.msrb.mxu2 %v1455_v51 }
  0x77   :  { %1006 = vmatpush.bf16.msrb.mxu3 %v1519_v55 }
  0x78   :  { %968 = vmatpush.bf16.msrb.mxu0 %v1319_v61 }
  0x79   :  { %981 = vmatpush.bf16.msrb.mxu1 %v1383_v62 }
  0x7a   :  { %994 = vmatpush.bf16.msrb.mxu2 %v1447_v63 }
  0x7b   :  { %1007 = vmatpush.bf16.msrb.mxu3 %v1511_v3 }
  0x7c   :  { %969 = vmatpush.bf16.msrb.mxu0 %v1311_v9 }
  0x7d   :  { %982 = vmatpush.bf16.msrb.mxu1 %v1375_v10  ;;  %v1030_v10 = vperm.slane %v1027_v5, 1 }
  0x7e   :  { %995 = vmatpush.bf16.msrb.mxu2 %v1439_v11 }
  0x7f   :  { %1008 = vmatpush.bf16.msrb.mxu3 %v1503_v15  ;;  %v1031_v15 = vrot.slane %v1030_v10, 6 }
  0x80   :  { %970 = vmatpush.bf16.msrb.mxu0 %v1303_v23 }
  0x81   :  { %983 = vmatpush.bf16.msrb.mxu1 %v1367_v24  ;;  %v1032_v16 = vsel %vm1018_vm0, %v1029_v14, %v1031_v15 }
  0x82   :  { %996 = vmatpush.bf16.msrb.mxu2 %v1431_v25 }
  0x83   :  { %1009 = vmatpush.bf16.msrb.mxu3 %v1495_v27  ;;  %971 = vmatmul.bf16.vlgmr.msrb.gmra.mxu0 %v2151_v31 }
  0x84   :  { %984 = vmatmul.bf16.vlgmr.msrb.gmra.mxu1 %v2164_v38 }
  0x85   :  { %997 = vmatmul.bf16.vlgmr.msrb.gmra.mxu2 %v2149_v29 }
  0x86   :  { %1010 = vmatmul.bf16.vlgmr.msrb.gmra.mxu3 %v2153_v32 }
  0xa3   :  { %v816_v28 = vpop.f32.mrf.mxu0 }
  0xa7   :  { %v829_v21 = vpop.f32.mrf.mxu1 }
  0xa8   :  { %v830_v22 = vadd.f32 %v829_v21, %v816_v28 }
  0xaa   :  { %v842_v26 = vpop.f32.mrf.mxu2 }
  0xab   :  { %v843_v30 = vadd.f32 %v842_v26, %v830_v22  ;;  %v855_v33 = vpop.f32.mrf.mxu3  ;;  %v818_v35 = vpop.f32.mrf.mxu0 }
  0xad   :  { %v856_v34 = vadd.f32 %v855_v33, %v843_v30 }
  0xaf   :  { %v831_v36 = vpop.f32.mrf.mxu1 }
  0xb2   :  { %v844_v37 = vpop.f32.mrf.mxu2 }
  0xb3   :  { %v857_v39 = vpop.f32.mrf.mxu3 }
  0xc0   :  { %v868_v40 = vpop.f32.mrf.mxu0 }
  0xc1   :  { %v869_v41 = vadd.f32 %v868_v40, %v856_v34  ;;  %v881_v31 = vpop.f32.mrf.mxu1 }
  0xc3   :  { %v882_v42 = vadd.f32 %v881_v31, %v869_v41 }
  0xc8   :  { %v894_v38 = vpop.f32.mrf.mxu2  ;;  %v870_v29 = vpop.f32.mrf.mxu0 }
  0xc9   :  { %v907_v43 = vpop.f32.mrf.mxu3  ;;  %v883_v44 = vpop.f32.mrf.mxu1  ;;  %v895_v63 = vadd.f32 %v894_v38, %v882_v42 }
  0xcb   :  { %v908_v6 = vadd.f32 %v907_v43, %v895_v63 }
  0xd0   :  { %v896_v32 = vpop.f32.mrf.mxu2 }
  0xd1   :  { %v909_v45 = vpop.f32.mrf.mxu3 }
  0xe0   :  { %v920_v46 = vpop.f32.mrf.mxu0 }
  0xe1   :  { %v933_v47 = vpop.f32.mrf.mxu1 }
  0xe2   :  { %v934_v55 = vadd.f32 %v933_v47, %v920_v46 }
  0xe8   :  { %v946_v49 = vpop.f32.mrf.mxu2  ;;  %v922_v51 = vpop.f32.mrf.mxu0 }
  0xe9   :  { %v959_v50 = vpop.f32.mrf.mxu3  ;;  %v935_v52 = vpop.f32.mrf.mxu1  ;;  %v947_v56 = vadd.f32 %v946_v49, %v934_v55 }
  0xeb   :  { %v960_v57 = vadd.f32 %v959_v50, %v947_v56 }
  0xf0   :  { %v948_v53 = vpop.f32.mrf.mxu2 }
  0xf1   :  { %v961_v54 = vpop.f32.mrf.mxu3 }
 0x100   :  { %v972_v58 = vpop.f32.mrf.mxu0 }
 0x101   :  { %v985_v59 = vpop.f32.mrf.mxu1  ;;  %v973_v60 = vadd.f32 %v972_v58, %v960_v57 }
 0x103   :  { %v986_v61 = vadd.f32 %v985_v59, %v973_v60 }
 0x108   :  { %v998_v62 = vpop.f32.mrf.mxu2  ;;  %v974_v2 = vpop.f32.mrf.mxu0 }
 0x109   :  { %v999_v0 = vadd.f32 %v998_v62, %v986_v61  ;;  %v1011_v1 = vpop.f32.mrf.mxu3  ;;  %v987_v3 = vpop.f32.mrf.mxu1 }
 0x10b   :  { %v1012_v4 = vadd.f32 %v1011_v1, %v999_v0 }
 0x10d   :  { %v1017_v8 = vrot.slane %v1012_v4, 6 }
 0x10f   :  { %v1019_v9 = vsel %vm1018_vm0, %v908_v6, %v1017_v8 }
 0x110   :  { %v1021_v11 = vadd.f32 %v1019_v9, %v19_v7  ;;  %v1000_v12 = vpop.f32.mrf.mxu2 }
 0x111   :  { %v1013_v13 = vpop.f32.mrf.mxu3 }
 0x112   :  { %1022 = vst [vmem:[#allocation2] sm:$0xf] %v1021_v11 }
 0x119   :  { %v1026_v17 = vld [vmem:[#allocation2] sm:$0xf] }
 0x11a   :  { %v1034_v18 = vadd.f32 %v1032_v16, %v1026_v17 }
 0x11c   :  { %1035 = vst [vmem:[%s2514_s3] sm:$0xf] %v1034_v18 }

// kernel: pipeline_forward.24
= control target key start
LH: loop header
LB: loop body
LE: loop exit
PB: predicated region body
PF: predicated region fallthrough
CT: control target
= control target key end

     0   :  { %v119_v1 = vmov 0   ;;  %v120_v2 = vmov 2   ;;  %s158_s0 = inlined_call_operand.vmem [shape: f32[8,3], index: 0, kind: input, shape index: {}]   ;;  %s159_s1 = inlined_call_operand.vmem [shape: bf16[8,256], index: 1, kind: input, shape index: {}]   ;;  %s160_s2 = inlined_call_operand.vmem [shape: bf16[8,256], index: 2, kind: input, shape index: {}]   ;;  %s161_s3 = inlined_call_operand.hbm [shape: f32[1,1,1], index: 3, kind: output, shape index: {}]  }
   0x1   :  { %v21_v0 = vld [vmem:[%s158_s0] sm:$0xff]  ;;  %89 = vset.pattern.permute.xlu0 %v119_v1  ;;  %91 = vset.pattern.permute.xlu1 %v120_v2 }
   0x2   :  { %8 = vsyncpa [#allocation3], 0  ;;  %30 = vperm.xlu0 %89, %v21_v0   ;;  %44 = vperm.xlu1 %91, %v21_v0   ;;  %v121_v3 = vmov 1   ;;  %v22_v5 = vld [vmem:[%s159_s1] sm:$0xff]  ;;  %vm19_vm0 = vcmask 0   ;;  %v122_v24 = vmov 0.0  }
   0x3   :  { %v25_v6 = vld [vmem:[%s160_s2] sm:$0xff]  ;;  %v23_v7 = vunpack.c.l.bf16 %v22_v5  ;;  %v24_v8 = vunpack.c.h.bf16 %v22_v5  ;;  %20 = vst.msk [vmem:[#allocation2] sm:$0x1] %vm19_vm0, %v122_v24  ;;  %s123_s0 = smov [#allocation2]   ;;  %s73_s19 = sshll.u32 %s161_s3, 4  ;;  %s74_s19 = int_to_ptr.hbm [resolvable:$true] %s73_s19 }
   0x4   :  { %v26_v9 = vunpack.c.l.bf16 %v25_v6  ;;  %v27_v10 = vunpack.c.h.bf16 %v25_v6  ;;  %s71_s1 = sshll.u32 %s123_s0, 4  ;;  %s72_s1 = int_to_ptr.vmem [resolvable:$true] %s71_s1 }
   0xa   :  { %90 = vset.pattern.permute.xlu0 %v121_v3  ;;  %v49_v32 = vld [vmem:[#allocation2] sm:$0x1] }
   0xb   :  { %36 = vperm.xlu0 %90, %v21_v0  }
  0x13   :  { %92 = vset.pattern.permute.xlu0 %v120_v2 }
  0x74   :  { %v31_v4 = vpop.permute.xlu0 %30  ;;  %v45_v16 = vpop.permute.xlu1 %44 }
  0x75   :  { %v33_v12 = vmul.f32 %v31_v4, %v23_v7  ;;  %v34_v13 = vmul.f32 %v31_v4, %v24_v8 }
  0x7d   :  { %v37_v11 = vpop.permute.xlu0 %36 }
  0x7e   :  { %v39_v14 = vmul.f32 %v37_v11, %v26_v9  ;;  %v40_v15 = vmul.f32 %v37_v11, %v27_v10 }
  0x80   :  { %v41_v17 = vadd.f32 %v39_v14, %v33_v12  ;;  %v42_v18 = vadd.f32 %v40_v15, %v34_v13 }
  0x82   :  { %v47_v19 = vadd.f32 %v45_v16, %v41_v17  ;;  %v48_v20 = vadd.f32 %v45_v16, %v42_v18 }
  0x84   :  { %v50_v21 = vmul.f32 %v47_v19, %v47_v19  ;;  %v51_v22 = vmul.f32 %v48_v20, %v48_v20 }
  0x86   :  { %v52_v23 = vadd.f32 %v51_v22, %v50_v21 }
  0x88   :  { %53 = vadd.xlane.f32.xlu1 %v52_v23 }
  0xfb   :  { %v54_v25 = vpop.xlane.xlu1 %53 }
  0xfc   :  { %v55_v26 = vrot.slane %v54_v25, 4 }
  0xfe   :  { %v56_v27 = vadd.f32 %v55_v26, %v54_v25 }
 0x100   :  { %v57_v28 = vrot.slane %v56_v27, 2 }
 0x102   :  { %v58_v29 = vadd.f32 %v57_v28, %v56_v27 }
 0x104   :  { %v59_v30 = vrot.slane %v58_v29, 1 }
 0x106   :  { %v60_v31 = vadd.f32 %v59_v30, %v58_v29 }
 0x108   :  { %82 = vpush %v60_v31 }
 0x139   :  { %s83_s20 = spop %82 }
 0x13a   :  { %v62_v33 = vstv %s83_s20 }
 0x13b   :  { %v63_v34 = vadd.f32 %v62_v33, %v49_v32 }
 0x13d   :  { %65 = vst.msk [vmem:[#allocation2] sm:$0x1] %vm19_vm0, %v63_v34 }
 0x13e   :  { %76 = dma.vmem_to_hbm [thread:$0]  %s72_s1, 16, %s74_s19, [#allocation3]  }
 0x13f   :  { %117 = dma.done.wait [#allocation3], 16  }
 0x140   :  { %118 = vsyncadd [#allocation3], 4294967280 }
 0x141   :  { %81 = vsyncpa [#allocation3], 1 }

// kernel: pipeline_forward.25
= control target key start
LH: loop header
LB: loop body
LE: loop exit
PB: predicated region body
PF: predicated region fallthrough
CT: control target
= control target key end

     0   :  { %s210_s0 = inlined_call_operand.vmem [shape: f32[16,32], index: 0, kind: input, shape index: {}]   ;;  %s211_s1 = inlined_call_operand.vmem [shape: f32[32,8], index: 1, kind: input, shape index: {}]   ;;  %s212_s2 = inlined_call_operand.vmem [shape: f32[1,8], index: 2, kind: input, shape index: {}]   ;;  %s213_s3 = inlined_call_operand.hbm [shape: f32[1,1], index: 3, kind: output, shape index: {}]  }
   0x1   :  { %v35_v0 = vld [vmem:[%s211_s1 + $0x18] sm:$0xff]  ;;  %v34_v1 = vld [vmem:[%s211_s1 + $0x10] sm:$0xff]  ;;  %v21_v2 = vld [vmem:[%s210_s0] sm:$0xff] }
   0x2   :  { %54 = vmatpush.msra.mxu0 %v35_v0  ;;  %126 = vmatpush.msra.mxu1 %v35_v0  ;;  %v33_v3 = vld [vmem:[%s211_s1 + $0x8] sm:$0xff]  ;;  %v23_v4 = vmul.f32 %v21_v2, %v21_v2 }
   0x3   :  { %8 = vsyncpa [#allocation3], 0  ;;  %vm25_vm0 = vcmask 261120   ;;  %v32_v5 = vld [vmem:[%s211_s1] sm:$0xff]  ;;  %v22_v7 = vld [vmem:[%s210_s0 + $0x8] sm:$0xff]  ;;  %vm75_vm1 = vcmask 64512  }
   0x4   :  { %55 = vmatpush.msra.mxu0 %v34_v1  ;;  %127 = vmatpush.msra.mxu1 %v34_v1  ;;  %v26_v6 = vsel %vm25_vm0, %v23_v4, 0.0  ;;  %v24_v8 = vmul.f32 %v22_v7, %v22_v7  ;;  %v134_v15 = vld [vmem:[%s212_s2] ss:$0 sm:$0xff]  ;;  %vm85_vm2 = vcmask 7168   ;;  %vm19_vm3 = vcmask 0   ;;  %s162_s2 = smov [#allocation2]  }
   0x5   :  { %27 = vadd.xlane.f32.xlu0 %v26_v6  ;;  %v161_v30 = vmov 0.0   ;;  %s113_s25 = sshll.u32 %s162_s2, 4  ;;  %s115_s28 = sshll.u32 %s213_s3, 4  ;;  %s114_s25 = int_to_ptr.vmem [resolvable:$true] %s113_s25  ;;  %s116_s28 = int_to_ptr.hbm [resolvable:$true] %s115_s28 }
   0x6   :  { %56 = vmatpush.msra.mxu0 %v33_v3  ;;  %128 = vmatpush.msra.mxu1 %v33_v3  ;;  %v29_v9 = vsel %vm25_vm0, %v24_v8, 0.0  ;;  %20 = vst.msk [vmem:[#allocation2] sm:$0x1] %vm19_vm3, %v161_v30 }
   0x8   :  { %57 = vmatpush.msra.mxu0 %v32_v5  ;;  %129 = vmatpush.msra.mxu1 %v32_v5 }
   0x9   :  { %124 = vmatmul.msk.f32.vlgmr.msra.gmra.mxu0 %vm25_vm0, %v21_v2  ;;  %125 = vmatmul.msk.f32.vlgmr.msra.gmra.mxu1 %vm25_vm0, %v22_v7 }
   0xd   :  { %30 = vadd.xlane.f32.xlu0 %v29_v9  ;;  %v84_v38 = vld [vmem:[#allocation2] sm:$0x1] }
  0x78   :  { %v28_v10 = vpop.xlane.xlu0 %27 }
  0x80   :  { %v31_v16 = vpop.xlane.xlu0 %30 }
  0x86   :  { %v59_v11 = vpop.f32.mrf.mxu0  ;;  %v62_v12 = vpop.f32.mrf.mxu1 }
  0x87   :  { %v65_v13 = vmul.f32 2.0, %v59_v11  ;;  %v66_v14 = vmul.f32 2.0, %v62_v12 }
  0x89   :  { %v67_v17 = vsub.f32 %v28_v10, %v65_v13  ;;  %v68_v19 = vsub.f32 %v31_v16, %v66_v14 }
  0x8b   :  { %v73_v18 = vadd.f32 %v134_v15, %v67_v17  ;;  %v74_v21 = vadd.f32 %v134_v15, %v68_v19 }
  0x8d   :  { %v76_v20 = vsel %vm75_vm1, %v73_v18, inf  ;;  %v79_v22 = vsel %vm75_vm1, %v74_v21, inf }
  0x8e   :  { %77 = vmin.xlane.f32.xlu1 %v76_v20 }
  0x96   :  { %80 = vmin.xlane.f32.xlu1 %v79_v22 }
 0x101   :  { %v78_v23 = vpop.xlane.xlu1 %77 }
 0x102   :  { %v82_v24 = vmax.f32 %v78_v23, 0.0 }
 0x104   :  { %v86_v27 = vsel %vm85_vm2, %v82_v24, 0.0 }
 0x109   :  { %v81_v25 = vpop.xlane.xlu1 %80 }
 0x10a   :  { %v83_v26 = vmax.f32 %v81_v25, 0.0 }
 0x10c   :  { %v87_v28 = vsel %vm85_vm2, %v83_v26, 0.0 }
 0x10d   :  { %v88_v29 = vadd.f32 %v87_v28, %v86_v27 }
 0x10f   :  { %89 = vadd.xlane.f32.xlu2 %v88_v29 }
 0x182   :  { %v90_v31 = vpop.xlane.xlu2 %89 }
 0x183   :  { %v91_v32 = vrot.slane %v90_v31, 4 }
 0x185   :  { %v92_v33 = vadd.f32 %v91_v32, %v90_v31 }
 0x187   :  { %v93_v34 = vrot.slane %v92_v33, 2 }
 0x189   :  { %v94_v35 = vadd.f32 %v93_v34, %v92_v33 }
 0x18b   :  { %v95_v36 = vrot.slane %v94_v35, 1 }
 0x18d   :  { %v96_v37 = vadd.f32 %v95_v36, %v94_v35 }
 0x18f   :  { %130 = vpush %v96_v37 }
 0x1c0   :  { %s131_s0 = spop %130 }
 0x1c1   :  { %v98_v39 = vstv %s131_s0 }
 0x1c2   :  { %v99_v40 = vadd.f32 %v98_v39, %v84_v38 }
 0x1c4   :  { %101 = vst.msk [vmem:[#allocation2] sm:$0x1] %vm19_vm3, %v99_v40 }
 0x1cb   :  { %v105_v41 = vld [vmem:[#allocation2] sm:$0x1] }
 0x1cc   :  { %v106_v42 = vmul.f32 0.001953125, %v105_v41 }
 0x1ce   :  { %107 = vst.msk [vmem:[#allocation2] sm:$0x1] %vm19_vm3, %v106_v42 }
 0x1cf   :  { %118 = dma.vmem_to_hbm [thread:$0]  %s114_s25, 16, %s116_s28, [#allocation3]  }
 0x1d0   :  { %159 = dma.done.wait [#allocation3], 16  }
 0x1d1   :  { %160 = vsyncadd [#allocation3], 4294967280 }
 0x1d2   :  { %123 = vsyncpa [#allocation3], 1 }

</bundles_post_ra>
